<compile_context>
chip_gen: v5e
topology: v5e:2x2
jax: 0.10.0
libtpu: 0.0.40
codegen_flags: <defaults>
</compile_context>

<pallas_src>
import numpy as np
import jax
import jax.numpy as jnp
from jax.experimental import pallas as pl
from jax.experimental.pallas import tpu as pltpu

# ---------------- config (consistent with the module's __init__) -------------
T_CUTS = 4        # time_cuts
TE     = 8        # t_expand_dim
L      = 2        # num_layers
IN_N   = 16       # in_n_feats
IN_E   = 8        # in_e_feats
HN     = 24       # hidden_n_feats
HE     = 8        # hidden_e_feats
HEADS  = 4        # num_heads
N      = 16       # nodes per graph
D      = HN + TE  # embed dim of the attention stage (32)
DH     = D // HEADS
NHE    = N * HE   # 128 (lane-dense edge width)
SLOPE  = 0.01     # F.leaky_relu default negative slope

assert D % HEADS == 0


def _leaky(x):
    return jnp.where(x > 0, x, SLOPE * x)


# ============================ kernel 1: per-time-cut GNN stack ============================
# grid axis 0 = time cut t.  h = fnh(x); L x [EGATConv -> leaky_relu]; concat time feature.
def gnn_time_kernel(x_ref, adj_ref, ce_ref, fnh_ref, wbig_ref, vecs_ref,
                    diagm_ref, spool_ref, out_ref):
    x   = x_ref[0]                 # (N, IN_N)
    adj = adj_ref[0]               # (N_dst, N_src)   dst-major adjacency mask
    diagm = diagm_ref[...]         # (N, N*HE)   [r, s*HE+h] = delta(r==s)
    spool = spool_ref[...]         # (N*HE, N)   [s*HE+h, s'] = delta(s==s')

    # fnh linear (weight rows 0:IN_N, bias row IN_N)
    h = jnp.dot(x, fnh_ref[0:IN_N, :], preferred_element_type=jnp.float32) \
        + fnh_ref[IN_N:IN_N + 1, :]

    for l in range(L):
        # one fused projection: [ w_nj_exp | w_ni_exp | w_node ]  -> (N, 2*NHE + HN)
        hp = jnp.dot(h, wbig_ref[0, l], preferred_element_type=jnp.float32)
        a_dst  = hp[:, 0:NHE]                          # (N,128)  f_nj broadcast over src blocks
        b0     = hp[:, NHE:2 * NHE]                    # (N,128)  f_ni expanded
        bnode  = vecs_ref[0, 2 * l + 1:2 * l + 2, 0:HN]
        h_node = hp[:, 2 * NHE:2 * NHE + HN] + bnode   # (N, HN)

        # src contribution folded into a single row: [s*HE+h] = f_ni[s,h]
        b_row = jnp.sum(b0 * diagm, axis=0, keepdims=True)          # (1,128)
        f_edge = _leaky(a_dst + b_row + ce_ref[0, l])                # (N_dst, N_src*HE)

        # attention logits: per-edge dot with attn_v then sum over the HE lanes per src
        attnv  = vecs_ref[0, 2 * l:2 * l + 1, :]                     # (1,128)
        logits = jnp.dot(f_edge * attnv, spool,
                         preferred_element_type=jnp.float32)         # (N_dst, N_src)

        # masked edge softmax over in-edges (src axis = lanes)
        logits = jnp.where(adj > 0, logits, -1e30)
        logits = logits - jnp.max(logits, axis=-1, keepdims=True)
        p = jnp.exp(logits)                                          # masked entries underflow to 0
        p = p * pl.reciprocal(jnp.sum(p, axis=-1, keepdims=True), approx=True)

        h = _leaky(jnp.dot(p, h_node, preferred_element_type=jnp.float32))   # (N_dst, HN)

    tf  = vecs_ref[0, 2 * L:2 * L + 1, 0:TE]                          # (1, TE) time feature
    row = jnp.concatenate([h, jnp.broadcast_to(tf, (N, TE))], axis=-1)  # (N, D)
    out_ref[...] = row                                                # rows [t*N:(t+1)*N] of output


def gnn_stage(x_nodes, adj_ds, ce, p):
    in_specs = [
        pl.BlockSpec((1, N, IN_N),               lambda t: (t, 0, 0)),
        pl.BlockSpec((1, N, N),                  lambda t: (t, 0, 0)),
        pl.BlockSpec((1, L, N, NHE),             lambda t: (t, 0, 0, 0)),
        pl.BlockSpec((IN_N + 1, HN),             lambda t: (0, 0)),          # resident
        pl.BlockSpec((1, L, HN, 2 * NHE + HN),   lambda t: (t, 0, 0, 0)),
        pl.BlockSpec((1, 2 * L + 1, NHE),        lambda t: (t, 0, 0)),
        pl.BlockSpec((N, NHE),                   lambda t: (0, 0)),          # resident
        pl.BlockSpec((NHE, N),                   lambda t: (0, 0)),          # resident
    ]
    out_specs = pl.BlockSpec((N, D), lambda t: (t, 0))
    return pl.pallas_call(
        gnn_time_kernel,
        out_shape=jax.ShapeDtypeStruct((T_CUTS * N, D), jnp.float32),
        grid_spec=pltpu.PrefetchScalarGridSpec(
            num_scalar_prefetch=0, grid=(T_CUTS,),
            in_specs=in_specs, out_specs=out_specs),
        compiler_params=pltpu.CompilerParams(dimension_semantics=("parallel",)),
    )(x_nodes, adj_ds, ce, p['fnh_pack'], p['w_big'], p['vecs'],
      p['diag_mask'], p['sum_pool'])


# ============================ kernel 2: MultiheadAttention + FFN ============================
# xs rows are (t*N + n): node n's embedding at time t.  Everything stays sublane-stacked.
def mha_ffn_kernel(xs_ref, wqkv_ref, bqkv_ref, hpool_ref, hexp_ref, wtail_ref, out_ref):
    xs = xs_ref[...]                                                   # (T*N, D)
    qs = jnp.dot(xs, wqkv_ref[0], preferred_element_type=jnp.float32) + bqkv_ref[0:1, :]
    ks = jnp.dot(xs, wqkv_ref[1], preferred_element_type=jnp.float32) + bqkv_ref[1:2, :]
    vs = jnp.dot(xs, wqkv_ref[2], preferred_element_type=jnp.float32) + bqkv_ref[2:3, :]
    hpool = hpool_ref[...]        # (D, HEADS)  per-head score pooling (scale folded in)
    hexp  = hexp_ref[...]         # (HEADS, D)  prob -> value-lane expansion

    acc = jnp.zeros((N, HN), jnp.float32)
    for t in range(T_CUTS):
        qt = qs[t * N:(t + 1) * N, :]                                  # (N, D)
        qT = jnp.concatenate([qt] * T_CUTS, axis=0)                    # (T*N, D) rows s*N+n = q[t,n]
        sc = jnp.dot(qT * ks, hpool, preferred_element_type=jnp.float32)   # (T*N, H)

        m = sc[0:N]
        for s in range(1, T_CUTS):
            m = jnp.maximum(m, sc[s * N:(s + 1) * N])
        e = jnp.exp(sc - jnp.concatenate([m] * T_CUTS, axis=0))
        den = e[0:N]
        for s in range(1, T_CUTS):
            den = den + e[s * N:(s + 1) * N]
        rden = pl.reciprocal(den, approx=True)
        pr = e * jnp.concatenate([rden] * T_CUTS, axis=0)              # softmax over key time s

        pe = jnp.dot(pr, hexp, preferred_element_type=jnp.float32)     # (T*N, D)
        zv = pe * vs
        ctx = zv[0:N]
        for s in range(1, T_CUTS):
            ctx = ctx + zv[s * N:(s + 1) * N]                          # (N, D) all heads

        # folded out-proj + FFN slice for query time t
        acc = acc + jnp.dot(ctx, wtail_ref[t * D:(t + 1) * D, :],
                            preferred_element_type=jnp.float32)
    out_ref[...] = acc + wtail_ref[T_CUTS * D:T_CUTS * D + 1, :]        # folded bo/b_ffn bias


def mha_ffn_stage(xs, p):
    def full(shape):
        r = len(shape)
        return pl.BlockSpec(shape, lambda i, _r=r: (0,) * _r)
    in_specs = [full((T_CUTS * N, D)),
                full((3, D, D)), full((3, D)),
                full((D, HEADS)), full((HEADS, D)),
                full((T_CUTS * D + 1, HN))]
    return pl.pallas_call(
        mha_ffn_kernel,
        out_shape=jax.ShapeDtypeStruct((N, HN), jnp.float32),
        grid_spec=pltpu.PrefetchScalarGridSpec(
            num_scalar_prefetch=0, grid=(1,),
            in_specs=in_specs, out_specs=full((N, HN))),
        compiler_params=pltpu.CompilerParams(dimension_semantics=("arbitrary",)),
    )(xs, p['w_qkv3'], p['b_qkv3'], p['h_pool'], p['h_exp'], p['w_tail'])


def gat_te_forward(x_nodes, adj, efeat, params):
    # layout-only / h-independent preprocessing (tiny XLA ops)
    adj_ds = jnp.swapaxes(adj, 1, 2)                                           # (T, Nd, Ns)
    # hoisted edge-feature projection: ce[t,l,d, s*HE+h] = sum_e efeat[t,s,d,e]*w_fij[t,l,e,h]
    ce = jnp.einsum('tsde,tleh->tldsh', efeat, params['w_fij']).reshape(
        T_CUTS, L, N, NHE)

    feats = gnn_stage(x_nodes, adj_ds, ce, params)        # (T*N, D), t-major rows
    return mha_ffn_stage(feats, params)                   # (N, HN)


# ============================ pure-JAX reference (same math) ============================
def reference_forward(x_nodes, adj, efeat, p):
    feats = []
    for t in range(T_CUTS):
        h = x_nodes[t] @ p['w_fnh'] + p['b_fnh']
        for j in range(L):
            f_ni = h @ p['w_ni'][t, j]
            f_nj = h @ p['w_nj'][t, j]
            f_fij = jnp.einsum('sde,eh->sdh', efeat[t], p['w_fij'][t, j])
            f_edge = _leaky(f_ni[:, None, :] + f_nj[None, :, :] + f_fij)
            logits = jnp.sum(f_edge * p['attn_v'][t, j][None, :, :], axis=-1)
            logits = jnp.where(adj[t] > 0, logits, -1e30)
            logits = logits - jnp.max(logits, axis=0, keepdims=True)
            pr = jnp.exp(logits) * adj[t]
            pr = pr / jnp.sum(pr, axis=0, keepdims=True)
            h_node = h @ p['w_node'][t, j] + p['b_node'][t, j]
            h = _leaky(jnp.einsum('sd,sh->dh', pr, h_node))
        tfeat = jnp.cos(float(t) * p['basis_freq'])            # (1, TE)
        feats.append(jnp.concatenate([h, jnp.broadcast_to(tfeat, (N, TE))], axis=-1))
    x = jnp.stack(feats, axis=1)                               # (N, T, D)

    q = jnp.einsum('ntd,de->nte', x, p['wq_t']) + p['bq'][None]
    k = jnp.einsum('ntd,de->nte', x, p['wk_t']) + p['bk'][None]
    v = jnp.einsum('ntd,de->nte', x, p['wv_t']) + p['bv'][None]
    scale = 1.0 / (DH ** 0.5)
    attn_out = jnp.zeros((N, T_CUTS, D), jnp.float32)
    for hh in range(HEADS):
        lo, hi = hh * DH, (hh + 1) * DH
        s = jnp.einsum('ntd,nsd->nts', q[:, :, lo:hi], k[:, :, lo:hi]) * scale
        s = s - jnp.max(s, axis=-1, keepdims=True)
        pr = jnp.exp(s)
        pr = pr / jnp.sum(pr, axis=-1, keepdims=True)
        ctx = jnp.einsum('nts,nsd->ntd', pr, v[:, :, lo:hi])
        attn_out = attn_out + jnp.einsum('ntd,de->nte', ctx, p['wo_t'][lo:hi, :])
    attn_out = attn_out + p['bo'][None]
    acc = jnp.zeros((N, HN), jnp.float32)
    for tt in range(T_CUTS):
        acc = acc + attn_out[:, tt, :] @ p['w_ffn'][tt]
    return acc + p['b_ffn']


# ============================ deterministic parameter init ============================
def init_params(key):
    ks = jax.random.split(key, 20)
    s = 0.1
    nrm = lambda k, shp: s * jax.random.normal(k, shp, jnp.float32)
    p = {}
    p['basis_freq'] = (1.0 / (10.0 ** jnp.linspace(0.0, 9.0, TE))).reshape(1, TE).astype(jnp.float32)
    p['w_fnh'] = nrm(ks[0], (IN_N, HN));            p['b_fnh'] = nrm(ks[1], (1, HN))
    p['w_ni']  = nrm(ks[2], (T_CUTS, L, HN, HE))
    p['w_nj']  = nrm(ks[3], (T_CUTS, L, HN, HE))
    p['w_fij'] = nrm(ks[4], (T_CUTS, L, IN_E, HE))
    p['attn_v'] = nrm(ks[5], (T_CUTS, L, 1, HE))
    p['w_node'] = nrm(ks[6], (T_CUTS, L, HN, HN));  p['b_node'] = nrm(ks[7], (T_CUTS, L, 1, HN))
    p['wq_t'] = nrm(ks[8],  (D, D));  p['bq'] = nrm(ks[11], (1, D))
    p['wk_t'] = nrm(ks[9],  (D, D));  p['bk'] = nrm(ks[12], (1, D))
    p['wv_t'] = nrm(ks[10], (D, D));  p['bv'] = nrm(ks[13], (1, D))
    p['wo_t'] = nrm(ks[14], (D, D));  p['bo'] = nrm(ks[15], (1, D))
    p['w_ffn'] = nrm(ks[16], (T_CUTS, D, HN))       # ffn.weight^T reshaped (T, D, HN)
    p['b_ffn'] = nrm(ks[17], (1, HN))
    return p


def build_derived(p):
    """Precompute packed / folded constants consumed by the kernels (done once)."""
    d = dict(p)

    # --- kernel 1 ---
    d['fnh_pack'] = jnp.concatenate([p['w_fnh'], p['b_fnh']], axis=0)          # (IN_N+1, HN)
    w_nj_exp = jnp.tile(p['w_nj'], (1, 1, 1, N))                               # (T,L,HN,NHE)
    w_ni_exp = jnp.tile(p['w_ni'], (1, 1, 1, N))                               # (T,L,HN,NHE)
    d['w_big'] = jnp.concatenate([w_nj_exp, w_ni_exp, p['w_node']], axis=-1)   # (T,L,HN,2*NHE+HN)

    attnv_row = jnp.tile(p['attn_v'], (1, 1, 1, N))                            # (T,L,1,NHE)
    bnode_pad = jnp.pad(p['b_node'], ((0, 0), (0, 0), (0, 0), (0, NHE - HN)))  # (T,L,1,NHE)
    vl = jnp.concatenate([attnv_row, bnode_pad], axis=2).reshape(T_CUTS, 2 * L, NHE)
    tvals = jnp.arange(T_CUTS, dtype=jnp.float32)
    tfe = jnp.cos(tvals[:, None] * p['basis_freq'][0][None, :])                # (T, TE)
    tfe_pad = jnp.pad(tfe, ((0, 0), (0, NHE - TE)))[:, None, :]                # (T,1,NHE)
    d['vecs'] = jnp.concatenate([vl, tfe_pad], axis=1)                         # (T, 2L+1, NHE)

    eye_n = jnp.eye(N, dtype=jnp.float32)
    d['diag_mask'] = jnp.repeat(eye_n, HE, axis=1)     # (N, NHE)
    d['sum_pool']  = jnp.repeat(eye_n, HE, axis=0)     # (NHE, N)

    # --- kernel 2 ---
    d['w_qkv3'] = jnp.stack([p['wq_t'], p['wk_t'], p['wv_t']], axis=0)         # (3, D, D)
    d['b_qkv3'] = jnp.concatenate([p['bq'], p['bk'], p['bv']], axis=0)         # (3, D)
    scale = 1.0 / (DH ** 0.5)
    hpool = np.zeros((D, HEADS), np.float32)
    hexp  = np.zeros((HEADS, D), np.float32)
    for hh in range(HEADS):
        hpool[hh * DH:(hh + 1) * DH, hh] = scale
        hexp[hh, hh * DH:(hh + 1) * DH] = 1.0
    d['h_pool'] = jnp.asarray(hpool)
    d['h_exp']  = jnp.asarray(hexp)
    # fold out-proj + FFN: wof2[t] = Wo @ W_ffn[t]; b_out = bo @ sum_t W_ffn[t] + b_ffn
    wof2 = jnp.einsum('de,teh->tdh', p['wo_t'], p['w_ffn'])                    # (T, D, HN)
    b_out = p['bo'] @ jnp.sum(p['w_ffn'], axis=0) + p['b_ffn']                 # (1, HN)
    d['w_tail'] = jnp.concatenate([wof2.reshape(T_CUTS * D, HN), b_out], axis=0)  # (T*D+1, HN)
    return d


if __name__ == "__main__":
    key = jax.random.PRNGKey(0)
    kp, kx, ka, ke = jax.random.split(key, 4)
    params = build_derived(init_params(kp))

    x_nodes = jax.random.normal(kx, (T_CUTS, N, IN_N), jnp.float32)
    adj = (jax.random.uniform(ka, (T_CUTS, N, N)) < 0.35).astype(jnp.float32)
    adj = jnp.maximum(adj, jnp.eye(N, dtype=jnp.float32)[None])        # self-loops
    efeat = jax.random.normal(ke, (T_CUTS, N, N, IN_E), jnp.float32)

    fwd = jax.jit(gat_te_forward)
    out = jax.block_until_ready(fwd(x_nodes, adj, efeat, params))
    assert out.shape == (N, HN), out.shape

    ref = reference_forward(x_nodes, adj, efeat, params)
    if not jnp.allclose(out, ref, rtol=1e-2, atol=1e-2):
        raise SystemExit("mismatch: max abs diff = %e"
                         % float(jnp.max(jnp.abs(out - ref))))
    print("KERNEL_OK")
</pallas_src>

<mosaic_0001>
module attributes {stable_mosaic.version = 11 : i64} {
  func.func @gnn_time_kernel(%arg0: i32, %arg1: memref<1x16x16xf32, #tpu.memory_space<vmem>>, %arg2: memref<1x16x16xf32, #tpu.memory_space<vmem>>, %arg3: memref<1x2x16x128xf32, #tpu.memory_space<vmem>>, %arg4: memref<17x24xf32, #tpu.memory_space<vmem>>, %arg5: memref<1x2x24x280xf32, #tpu.memory_space<vmem>>, %arg6: memref<1x5x128xf32, #tpu.memory_space<vmem>>, %arg7: memref<16x128xf32, #tpu.memory_space<vmem>>, %arg8: memref<128x16xf32, #tpu.memory_space<vmem>>, %arg9: memref<16x32xf32, #tpu.memory_space<vmem>>) attributes {dimension_semantics = [#tpu.dimension_semantics<parallel>], iteration_bounds = array<i64: 4>, scalar_prefetch = 0 : i64, scratch_operands = 0 : i64, tpu.core_type = #tpu.core_type<tc>, window_params = [{transform_indices = @transform_0, window_bounds = array<i64: 1, 16, 16>}, {transform_indices = @transform_1, window_bounds = array<i64: 1, 16, 16>}, {transform_indices = @transform_2, window_bounds = array<i64: 1, 2, 16, 128>}, {pipeline_mode = #tpu.pipeline_mode<synchronous>, transform_indices = @transform_3, window_bounds = array<i64: 17, 24>}, {transform_indices = @transform_4, window_bounds = array<i64: 1, 2, 24, 280>}, {transform_indices = @transform_5, window_bounds = array<i64: 1, 5, 128>}, {pipeline_mode = #tpu.pipeline_mode<synchronous>, transform_indices = @transform_6, window_bounds = array<i64: 16, 128>}, {pipeline_mode = #tpu.pipeline_mode<synchronous>, transform_indices = @transform_7, window_bounds = array<i64: 128, 16>}, {transform_indices = @transform_8, window_bounds = array<i64: 16, 32>}]} {
    %c0 = arith.constant 0 : index
    %c0_0 = arith.constant 0 : index
    %c0_1 = arith.constant 0 : index
    %0 = vector.load %arg1[%c0, %c0_0, %c0_1] : memref<1x16x16xf32, #tpu.memory_space<vmem>>, vector<1x16x16xf32>
    %1 = vector.shape_cast %0 : vector<1x16x16xf32> to vector<16x16xf32>
    %c0_2 = arith.constant 0 : index
    %c0_3 = arith.constant 0 : index
    %c0_4 = arith.constant 0 : index
    %2 = vector.load %arg2[%c0_2, %c0_3, %c0_4] : memref<1x16x16xf32, #tpu.memory_space<vmem>>, vector<1x16x16xf32>
    %3 = vector.shape_cast %2 : vector<1x16x16xf32> to vector<16x16xf32>
    %c0_5 = arith.constant 0 : index
    %c0_6 = arith.constant 0 : index
    %4 = vector.load %arg7[%c0_5, %c0_6] : memref<16x128xf32, #tpu.memory_space<vmem>>, vector<16x128xf32>
    %c0_7 = arith.constant 0 : index
    %c0_8 = arith.constant 0 : index
    %5 = vector.load %arg8[%c0_7, %c0_8] : memref<128x16xf32, #tpu.memory_space<vmem>>, vector<128x16xf32>
    %c0_9 = arith.constant 0 : index
    %c0_10 = arith.constant 0 : index
    %6 = vector.load %arg4[%c0_9, %c0_10] : memref<17x24xf32, #tpu.memory_space<vmem>>, vector<16x24xf32>
    %cst = arith.constant dense<0.000000e+00> : vector<16x24xf32>
    %7 = tpu.matmul %1, %6, %cst {dimension_numbers = #tpu.dot_dimension_numbers<[1], [0], [0], [1], [0, 0, 1, 1], [], []>} : vector<16x16xf32>, vector<16x24xf32>, vector<16x24xf32> -> vector<16x24xf32>
    %c16 = arith.constant 16 : index
    %c0_11 = arith.constant 0 : index
    %8 = vector.load %arg4[%c16, %c0_11] : memref<17x24xf32, #tpu.memory_space<vmem>>, vector<1x24xf32>
    %9 = vector.broadcast %8 : vector<1x24xf32> to vector<16x24xf32>
    %10 = arith.addf %7, %9 : vector<16x24xf32>
    %c0_12 = arith.constant 0 : index
    %c0_13 = arith.constant 0 : index
    %c0_14 = arith.constant 0 : index
    %c0_15 = arith.constant 0 : index
    %11 = vector.load %arg5[%c0_12, %c0_13, %c0_14, %c0_15] : memref<1x2x24x280xf32, #tpu.memory_space<vmem>>, vector<1x1x24x280xf32>
    %12 = vector.shape_cast %11 : vector<1x1x24x280xf32> to vector<24x280xf32>
    %cst_16 = arith.constant dense<0.000000e+00> : vector<16x280xf32>
    %13 = tpu.matmul %10, %12, %cst_16 {dimension_numbers = #tpu.dot_dimension_numbers<[1], [0], [0], [1], [0, 0, 1, 1], [], []>} : vector<16x24xf32>, vector<24x280xf32>, vector<16x280xf32> -> vector<16x280xf32>
    %14 = vector.extract_strided_slice %13 {offsets = [0, 0], sizes = [16, 128], strides = [1, 1]} : vector<16x280xf32> to vector<16x128xf32>
    %15 = vector.extract_strided_slice %13 {offsets = [0, 128], sizes = [16, 128], strides = [1, 1]} : vector<16x280xf32> to vector<16x128xf32>
    %c0_17 = arith.constant 0 : index
    %c1 = arith.constant 1 : index
    %c0_18 = arith.constant 0 : index
    %16 = vector.load %arg6[%c0_17, %c1, %c0_18] : memref<1x5x128xf32, #tpu.memory_space<vmem>>, vector<1x1x24xf32>
    %17 = vector.shape_cast %16 : vector<1x1x24xf32> to vector<1x24xf32>
    %18 = vector.extract_strided_slice %13 {offsets = [0, 256], sizes = [16, 24], strides = [1, 1]} : vector<16x280xf32> to vector<16x24xf32>
    %19 = vector.broadcast %17 : vector<1x24xf32> to vector<16x24xf32>
    %20 = arith.addf %18, %19 : vector<16x24xf32>
    %21 = arith.mulf %15, %4 : vector<16x128xf32>
    %cst_19 = arith.constant dense<0.000000e+00> : vector<128xf32>
    %22 = vector.multi_reduction <add>, %21, %cst_19 [0] : vector<16x128xf32> to vector<128xf32>
    %23 = vector.shape_cast %22 : vector<128xf32> to vector<1x128xf32>
    %24 = vector.broadcast %23 : vector<1x128xf32> to vector<16x128xf32>
    %25 = arith.addf %14, %24 : vector<16x128xf32>
    %c0_20 = arith.constant 0 : index
    %c0_21 = arith.constant 0 : index
    %c0_22 = arith.constant 0 : index
    %c0_23 = arith.constant 0 : index
    %26 = vector.load %arg3[%c0_20, %c0_21, %c0_22, %c0_23] : memref<1x2x16x128xf32, #tpu.memory_space<vmem>>, vector<1x1x16x128xf32>
    %27 = vector.shape_cast %26 : vector<1x1x16x128xf32> to vector<16x128xf32>
    %28 = arith.addf %25, %27 : vector<16x128xf32>
    %cst_24 = arith.constant 0.000000e+00 : f32
    %29 = vector.broadcast %cst_24 : f32 to vector<16x128xf32>
    %30 = arith.cmpf ogt, %28, %29 : vector<16x128xf32>
    %cst_25 = arith.constant 0.00999999977 : f32
    %31 = vector.broadcast %cst_25 : f32 to vector<16x128xf32>
    %32 = arith.mulf %31, %28 : vector<16x128xf32>
    %33 = arith.select %30, %28, %32 : vector<16x128xi1>, vector<16x128xf32>
    %c0_26 = arith.constant 0 : index
    %c0_27 = arith.constant 0 : index
    %c0_28 = arith.constant 0 : index
    %34 = vector.load %arg6[%c0_26, %c0_27, %c0_28] : memref<1x5x128xf32, #tpu.memory_space<vmem>>, vector<1x1x128xf32>
    %35 = vector.shape_cast %34 : vector<1x1x128xf32> to vector<1x128xf32>
    %36 = vector.broadcast %35 : vector<1x128xf32> to vector<16x128xf32>
    %37 = arith.mulf %33, %36 : vector<16x128xf32>
    %cst_29 = arith.constant dense<0.000000e+00> : vector<16x16xf32>
    %38 = tpu.matmul %37, %5, %cst_29 {dimension_numbers = #tpu.dot_dimension_numbers<[1], [0], [0], [1], [0, 0, 1, 1], [], []>} : vector<16x128xf32>, vector<128x16xf32>, vector<16x16xf32> -> vector<16x16xf32>
    %cst_30 = arith.constant 0.000000e+00 : f32
    %39 = vector.broadcast %cst_30 : f32 to vector<16x16xf32>
    %40 = arith.cmpf ogt, %3, %39 : vector<16x16xf32>
    %cst_31 = arith.constant -1.000000e+30 : f32
    %41 = vector.broadcast %cst_31 : f32 to vector<16x16xf32>
    %42 = arith.select %40, %38, %41 : vector<16x16xi1>, vector<16x16xf32>
    %cst_32 = arith.constant dense<0xFF800000> : vector<16xf32>
    %43 = vector.multi_reduction <maximumf>, %42, %cst_32 [1] : vector<16x16xf32> to vector<16xf32>
    %44 = vector.shape_cast %43 : vector<16xf32> to vector<16x1xf32>
    %45 = vector.broadcast %44 : vector<16x1xf32> to vector<16x16xf32>
    %46 = arith.subf %42, %45 : vector<16x16xf32>
    %47 = math.exp %46 : vector<16x16xf32>
    %cst_33 = arith.constant dense<0.000000e+00> : vector<16xf32>
    %48 = vector.multi_reduction <add>, %47, %cst_33 [1] : vector<16x16xf32> to vector<16xf32>
    %49 = vector.shape_cast %48 : vector<16xf32> to vector<16x1xf32>
    %50 = tpu.reciprocal %49 {approx = true} : vector<16x1xf32> -> vector<16x1xf32>
    %51 = vector.broadcast %50 : vector<16x1xf32> to vector<16x16xf32>
    %52 = arith.mulf %47, %51 : vector<16x16xf32>
    %cst_34 = arith.constant dense<0.000000e+00> : vector<16x24xf32>
    %53 = tpu.matmul %52, %20, %cst_34 {dimension_numbers = #tpu.dot_dimension_numbers<[1], [0], [0], [1], [0, 0, 1, 1], [], []>} : vector<16x16xf32>, vector<16x24xf32>, vector<16x24xf32> -> vector<16x24xf32>
    %cst_35 = arith.constant 0.000000e+00 : f32
    %54 = vector.broadcast %cst_35 : f32 to vector<16x24xf32>
    %55 = arith.cmpf ogt, %53, %54 : vector<16x24xf32>
    %cst_36 = arith.constant 0.00999999977 : f32
    %56 = vector.broadcast %cst_36 : f32 to vector<16x24xf32>
    %57 = arith.mulf %56, %53 : vector<16x24xf32>
    %58 = arith.select %55, %53, %57 : vector<16x24xi1>, vector<16x24xf32>
    %c0_37 = arith.constant 0 : index
    %c1_38 = arith.constant 1 : index
    %c0_39 = arith.constant 0 : index
    %c0_40 = arith.constant 0 : index
    %59 = vector.load %arg5[%c0_37, %c1_38, %c0_39, %c0_40] : memref<1x2x24x280xf32, #tpu.memory_space<vmem>>, vector<1x1x24x280xf32>
    %60 = vector.shape_cast %59 : vector<1x1x24x280xf32> to vector<24x280xf32>
    %cst_41 = arith.constant dense<0.000000e+00> : vector<16x280xf32>
    %61 = tpu.matmul %58, %60, %cst_41 {dimension_numbers = #tpu.dot_dimension_numbers<[1], [0], [0], [1], [0, 0, 1, 1], [], []>} : vector<16x24xf32>, vector<24x280xf32>, vector<16x280xf32> -> vector<16x280xf32>
    %62 = vector.extract_strided_slice %61 {offsets = [0, 0], sizes = [16, 128], strides = [1, 1]} : vector<16x280xf32> to vector<16x128xf32>
    %63 = vector.extract_strided_slice %61 {offsets = [0, 128], sizes = [16, 128], strides = [1, 1]} : vector<16x280xf32> to vector<16x128xf32>
    %c0_42 = arith.constant 0 : index
    %c3 = arith.constant 3 : index
    %c0_43 = arith.constant 0 : index
    %64 = vector.load %arg6[%c0_42, %c3, %c0_43] : memref<1x5x128xf32, #tpu.memory_space<vmem>>, vector<1x1x24xf32>
    %65 = vector.shape_cast %64 : vector<1x1x24xf32> to vector<1x24xf32>
    %66 = vector.extract_strided_slice %61 {offsets = [0, 256], sizes = [16, 24], strides = [1, 1]} : vector<16x280xf32> to vector<16x24xf32>
    %67 = vector.broadcast %65 : vector<1x24xf32> to vector<16x24xf32>
    %68 = arith.addf %66, %67 : vector<16x24xf32>
    %69 = arith.mulf %63, %4 : vector<16x128xf32>
    %cst_44 = arith.constant dense<0.000000e+00> : vector<128xf32>
    %70 = vector.multi_reduction <add>, %69, %cst_44 [0] : vector<16x128xf32> to vector<128xf32>
    %71 = vector.shape_cast %70 : vector<128xf32> to vector<1x128xf32>
    %72 = vector.broadcast %71 : vector<1x128xf32> to vector<16x128xf32>
    %73 = arith.addf %62, %72 : vector<16x128xf32>
    %c0_45 = arith.constant 0 : index
    %c1_46 = arith.constant 1 : index
    %c0_47 = arith.constant 0 : index
    %c0_48 = arith.constant 0 : index
    %74 = vector.load %arg3[%c0_45, %c1_46, %c0_47, %c0_48] : memref<1x2x16x128xf32, #tpu.memory_space<vmem>>, vector<1x1x16x128xf32>
    %75 = vector.shape_cast %74 : vector<1x1x16x128xf32> to vector<16x128xf32>
    %76 = arith.addf %73, %75 : vector<16x128xf32>
    %cst_49 = arith.constant 0.000000e+00 : f32
    %77 = vector.broadcast %cst_49 : f32 to vector<16x128xf32>
    %78 = arith.cmpf ogt, %76, %77 : vector<16x128xf32>
    %cst_50 = arith.constant 0.00999999977 : f32
    %79 = vector.broadcast %cst_50 : f32 to vector<16x128xf32>
    %80 = arith.mulf %79, %76 : vector<16x128xf32>
    %81 = arith.select %78, %76, %80 : vector<16x128xi1>, vector<16x128xf32>
    %c0_51 = arith.constant 0 : index
    %c2 = arith.constant 2 : index
    %c0_52 = arith.constant 0 : index
    %82 = vector.load %arg6[%c0_51, %c2, %c0_52] : memref<1x5x128xf32, #tpu.memory_space<vmem>>, vector<1x1x128xf32>
    %83 = vector.shape_cast %82 : vector<1x1x128xf32> to vector<1x128xf32>
    %84 = vector.broadcast %83 : vector<1x128xf32> to vector<16x128xf32>
    %85 = arith.mulf %81, %84 : vector<16x128xf32>
    %cst_53 = arith.constant dense<0.000000e+00> : vector<16x16xf32>
    %86 = tpu.matmul %85, %5, %cst_53 {dimension_numbers = #tpu.dot_dimension_numbers<[1], [0], [0], [1], [0, 0, 1, 1], [], []>} : vector<16x128xf32>, vector<128x16xf32>, vector<16x16xf32> -> vector<16x16xf32>
    %cst_54 = arith.constant 0.000000e+00 : f32
    %87 = vector.broadcast %cst_54 : f32 to vector<16x16xf32>
    %88 = arith.cmpf ogt, %3, %87 : vector<16x16xf32>
    %cst_55 = arith.constant -1.000000e+30 : f32
    %89 = vector.broadcast %cst_55 : f32 to vector<16x16xf32>
    %90 = arith.select %88, %86, %89 : vector<16x16xi1>, vector<16x16xf32>
    %cst_56 = arith.constant dense<0xFF800000> : vector<16xf32>
    %91 = vector.multi_reduction <maximumf>, %90, %cst_56 [1] : vector<16x16xf32> to vector<16xf32>
    %92 = vector.shape_cast %91 : vector<16xf32> to vector<16x1xf32>
    %93 = vector.broadcast %92 : vector<16x1xf32> to vector<16x16xf32>
    %94 = arith.subf %90, %93 : vector<16x16xf32>
    %95 = math.exp %94 : vector<16x16xf32>
    %cst_57 = arith.constant dense<0.000000e+00> : vector<16xf32>
    %96 = vector.multi_reduction <add>, %95, %cst_57 [1] : vector<16x16xf32> to vector<16xf32>
    %97 = vector.shape_cast %96 : vector<16xf32> to vector<16x1xf32>
    %98 = tpu.reciprocal %97 {approx = true} : vector<16x1xf32> -> vector<16x1xf32>
    %99 = vector.broadcast %98 : vector<16x1xf32> to vector<16x16xf32>
    %100 = arith.mulf %95, %99 : vector<16x16xf32>
    %cst_58 = arith.constant dense<0.000000e+00> : vector<16x24xf32>
    %101 = tpu.matmul %100, %68, %cst_58 {dimension_numbers = #tpu.dot_dimension_numbers<[1], [0], [0], [1], [0, 0, 1, 1], [], []>} : vector<16x16xf32>, vector<16x24xf32>, vector<16x24xf32> -> vector<16x24xf32>
    %cst_59 = arith.constant 0.000000e+00 : f32
    %102 = vector.broadcast %cst_59 : f32 to vector<16x24xf32>
    %103 = arith.cmpf ogt, %101, %102 : vector<16x24xf32>
    %cst_60 = arith.constant 0.00999999977 : f32
    %104 = vector.broadcast %cst_60 : f32 to vector<16x24xf32>
    %105 = arith.mulf %104, %101 : vector<16x24xf32>
    %106 = arith.select %103, %101, %105 : vector<16x24xi1>, vector<16x24xf32>
    %c0_61 = arith.constant 0 : index
    %c4 = arith.constant 4 : index
    %c0_62 = arith.constant 0 : index
    %107 = vector.load %arg6[%c0_61, %c4, %c0_62] : memref<1x5x128xf32, #tpu.memory_space<vmem>>, vector<1x1x8xf32>
    %108 = vector.shape_cast %107 : vector<1x1x8xf32> to vector<1x8xf32>
    %109 = vector.shape_cast %108 : vector<1x8xf32> to vector<1x8xf32>
    %110 = vector.broadcast %109 : vector<1x8xf32> to vector<16x8xf32>
    %111 = tpu.concatenate %106, %110 in 1 : vector<16x24xf32>, vector<16x8xf32> -> vector<16x32xf32>
    %c0_63 = arith.constant 0 : index
    %c0_64 = arith.constant 0 : index
    %112 = vector.load %arg9[%c0_63, %c0_64] : memref<16x32xf32, #tpu.memory_space<vmem>>, vector<16x32xf32>
    tpu.vector_store %arg9[%c0_63, %c0_64], %111 {strides = array<i32>} : memref<16x32xf32, #tpu.memory_space<vmem>>, vector<16x32xf32>,
    return
  }
  func.func @transform_0(%arg0: i32) -> (i32, i32, i32) {
    %c0_i32 = arith.constant 0 : i32
    %c0_i32_0 = arith.constant 0 : i32
    %c0_i32_1 = arith.constant 0 : i32
    return %arg0, %c0_i32, %c0_i32_0 : i32, i32, i32
  }
  func.func @transform_1(%arg0: i32) -> (i32, i32, i32) {
    %c0_i32 = arith.constant 0 : i32
    %c0_i32_0 = arith.constant 0 : i32
    %c0_i32_1 = arith.constant 0 : i32
    return %arg0, %c0_i32, %c0_i32_0 : i32, i32, i32
  }
  func.func @transform_2(%arg0: i32) -> (i32, i32, i32, i32) {
    %c0_i32 = arith.constant 0 : i32
    %c0_i32_0 = arith.constant 0 : i32
    %c0_i32_1 = arith.constant 0 : i32
    %c0_i32_2 = arith.constant 0 : i32
    return %arg0, %c0_i32, %c0_i32_0, %c0_i32_1 : i32, i32, i32, i32
  }
  func.func @transform_3(%arg0: i32) -> (i32, i32) {
    %c0_i32 = arith.constant 0 : i32
    %c0_i32_0 = arith.constant 0 : i32
    %c0_i32_1 = arith.constant 0 : i32
    return %c0_i32, %c0_i32_0 : i32, i32
  }
  func.func @transform_4(%arg0: i32) -> (i32, i32, i32, i32) {
    %c0_i32 = arith.constant 0 : i32
    %c0_i32_0 = arith.constant 0 : i32
    %c0_i32_1 = arith.constant 0 : i32
    %c0_i32_2 = arith.constant 0 : i32
    return %arg0, %c0_i32, %c0_i32_0, %c0_i32_1 : i32, i32, i32, i32
  }
  func.func @transform_5(%arg0: i32) -> (i32, i32, i32) {
    %c0_i32 = arith.constant 0 : i32
    %c0_i32_0 = arith.constant 0 : i32
    %c0_i32_1 = arith.constant 0 : i32
    return %arg0, %c0_i32, %c0_i32_0 : i32, i32, i32
  }
  func.func @transform_6(%arg0: i32) -> (i32, i32) {
    %c0_i32 = arith.constant 0 : i32
    %c0_i32_0 = arith.constant 0 : i32
    %c0_i32_1 = arith.constant 0 : i32
    return %c0_i32, %c0_i32_0 : i32, i32
  }
  func.func @transform_7(%arg0: i32) -> (i32, i32) {
    %c0_i32 = arith.constant 0 : i32
    %c0_i32_0 = arith.constant 0 : i32
    %c0_i32_1 = arith.constant 0 : i32
    return %c0_i32, %c0_i32_0 : i32, i32
  }
  func.func @transform_8(%arg0: i32) -> (i32, i32) {
    %c0_i32 = arith.constant 0 : i32
    %c0_i32_0 = arith.constant 0 : i32
    return %arg0, %c0_i32 : i32, i32
  }
}

module attributes {stable_mosaic.version = 11 : i64} {
  func.func @mha_ffn_kernel(%arg0: i32, %arg1: memref<64x32xf32, #tpu.memory_space<vmem>>, %arg2: memref<3x32x32xf32, #tpu.memory_space<vmem>>, %arg3: memref<3x32xf32, #tpu.memory_space<vmem>>, %arg4: memref<32x4xf32, #tpu.memory_space<vmem>>, %arg5: memref<4x32xf32, #tpu.memory_space<vmem>>, %arg6: memref<129x24xf32, #tpu.memory_space<vmem>>, %arg7: memref<16x24xf32, #tpu.memory_space<vmem>>) attributes {dimension_semantics = [#tpu.dimension_semantics<arbitrary>], iteration_bounds = array<i64: 1>, scalar_prefetch = 0 : i64, scratch_operands = 0 : i64, tpu.core_type = #tpu.core_type<tc>, window_params = [{pipeline_mode = #tpu.pipeline_mode<synchronous>, transform_indices = @transform_0, window_bounds = array<i64: 64, 32>}, {pipeline_mode = #tpu.pipeline_mode<synchronous>, transform_indices = @transform_1, window_bounds = array<i64: 3, 32, 32>}, {pipeline_mode = #tpu.pipeline_mode<synchronous>, transform_indices = @transform_2, window_bounds = array<i64: 3, 32>}, {pipeline_mode = #tpu.pipeline_mode<synchronous>, transform_indices = @transform_3, window_bounds = array<i64: 32, 4>}, {pipeline_mode = #tpu.pipeline_mode<synchronous>, transform_indices = @transform_4, window_bounds = array<i64: 4, 32>}, {pipeline_mode = #tpu.pipeline_mode<synchronous>, transform_indices = @transform_5, window_bounds = array<i64: 129, 24>}, {pipeline_mode = #tpu.pipeline_mode<synchronous>, transform_indices = @transform_6, window_bounds = array<i64: 16, 24>}]} {
    %c0 = arith.constant 0 : index
    %c0_0 = arith.constant 0 : index
    %0 = vector.load %arg1[%c0, %c0_0] : memref<64x32xf32, #tpu.memory_space<vmem>>, vector<64x32xf32>
    %c0_1 = arith.constant 0 : index
    %c0_2 = arith.constant 0 : index
    %c0_3 = arith.constant 0 : index
    %1 = vector.load %arg2[%c0_1, %c0_2, %c0_3] : memref<3x32x32xf32, #tpu.memory_space<vmem>>, vector<1x32x32xf32>
    %2 = vector.shape_cast %1 : vector<1x32x32xf32> to vector<32x32xf32>
    %cst = arith.constant dense<0.000000e+00> : vector<64x32xf32>
    %3 = tpu.matmul %0, %2, %cst {dimension_numbers = #tpu.dot_dimension_numbers<[1], [0], [0], [1], [0, 0, 1, 1], [], []>} : vector<64x32xf32>, vector<32x32xf32>, vector<64x32xf32> -> vector<64x32xf32>
    %c0_4 = arith.constant 0 : index
    %c0_5 = arith.constant 0 : index
    %4 = vector.load %arg3[%c0_4, %c0_5] : memref<3x32xf32, #tpu.memory_space<vmem>>, vector<1x32xf32>
    %5 = vector.broadcast %4 : vector<1x32xf32> to vector<64x32xf32>
    %6 = arith.addf %3, %5 : vector<64x32xf32>
    %c1 = arith.constant 1 : index
    %c0_6 = arith.constant 0 : index
    %c0_7 = arith.constant 0 : index
    %7 = vector.load %arg2[%c1, %c0_6, %c0_7] : memref<3x32x32xf32, #tpu.memory_space<vmem>>, vector<1x32x32xf32>
    %8 = vector.shape_cast %7 : vector<1x32x32xf32> to vector<32x32xf32>
    %cst_8 = arith.constant dense<0.000000e+00> : vector<64x32xf32>
    %9 = tpu.matmul %0, %8, %cst_8 {dimension_numbers = #tpu.dot_dimension_numbers<[1], [0], [0], [1], [0, 0, 1, 1], [], []>} : vector<64x32xf32>, vector<32x32xf32>, vector<64x32xf32> -> vector<64x32xf32>
    %c1_9 = arith.constant 1 : index
    %c0_10 = arith.constant 0 : index
    %10 = vector.load %arg3[%c1_9, %c0_10] : memref<3x32xf32, #tpu.memory_space<vmem>>, vector<1x32xf32>
    %11 = vector.broadcast %10 : vector<1x32xf32> to vector<64x32xf32>
    %12 = arith.addf %9, %11 : vector<64x32xf32>
    %c2 = arith.constant 2 : index
    %c0_11 = arith.constant 0 : index
    %c0_12 = arith.constant 0 : index
    %13 = vector.load %arg2[%c2, %c0_11, %c0_12] : memref<3x32x32xf32, #tpu.memory_space<vmem>>, vector<1x32x32xf32>
    %14 = vector.shape_cast %13 : vector<1x32x32xf32> to vector<32x32xf32>
    %cst_13 = arith.constant dense<0.000000e+00> : vector<64x32xf32>
    %15 = tpu.matmul %0, %14, %cst_13 {dimension_numbers = #tpu.dot_dimension_numbers<[1], [0], [0], [1], [0, 0, 1, 1], [], []>} : vector<64x32xf32>, vector<32x32xf32>, vector<64x32xf32> -> vector<64x32xf32>
    %c2_14 = arith.constant 2 : index
    %c0_15 = arith.constant 0 : index
    %16 = vector.load %arg3[%c2_14, %c0_15] : memref<3x32xf32, #tpu.memory_space<vmem>>, vector<1x32xf32>
    %17 = vector.broadcast %16 : vector<1x32xf32> to vector<64x32xf32>
    %18 = arith.addf %15, %17 : vector<64x32xf32>
    %c0_16 = arith.constant 0 : index
    %c0_17 = arith.constant 0 : index
    %19 = vector.load %arg4[%c0_16, %c0_17] : memref<32x4xf32, #tpu.memory_space<vmem>>, vector<32x4xf32>
    %c0_18 = arith.constant 0 : index
    %c0_19 = arith.constant 0 : index
    %20 = vector.load %arg5[%c0_18, %c0_19] : memref<4x32xf32, #tpu.memory_space<vmem>>, vector<4x32xf32>
    %cst_20 = arith.constant 0.000000e+00 : f32
    %21 = vector.broadcast %cst_20 : f32 to vector<16x24xf32>
    %22 = vector.extract_strided_slice %6 {offsets = [0, 0], sizes = [16, 32], strides = [1, 1]} : vector<64x32xf32> to vector<16x32xf32>
    %23 = tpu.concatenate %22, %22, %22, %22 in 0 : vector<16x32xf32>, vector<16x32xf32>, vector<16x32xf32>, vector<16x32xf32> -> vector<64x32xf32>
    %24 = arith.mulf %23, %12 : vector<64x32xf32>
    %cst_21 = arith.constant dense<0.000000e+00> : vector<64x4xf32>
    %25 = tpu.matmul %24, %19, %cst_21 {dimension_numbers = #tpu.dot_dimension_numbers<[1], [0], [0], [1], [0, 0, 1, 1], [], []>} : vector<64x32xf32>, vector<32x4xf32>, vector<64x4xf32> -> vector<64x4xf32>
    %26 = vector.extract_strided_slice %25 {offsets = [0, 0], sizes = [16, 4], strides = [1, 1]} : vector<64x4xf32> to vector<16x4xf32>
    %27 = vector.extract_strided_slice %25 {offsets = [16, 0], sizes = [16, 4], strides = [1, 1]} : vector<64x4xf32> to vector<16x4xf32>
    %28 = arith.maximumf %26, %27 : vector<16x4xf32>
    %29 = vector.extract_strided_slice %25 {offsets = [32, 0], sizes = [16, 4], strides = [1, 1]} : vector<64x4xf32> to vector<16x4xf32>
    %30 = arith.maximumf %28, %29 : vector<16x4xf32>
    %31 = vector.extract_strided_slice %25 {offsets = [48, 0], sizes = [16, 4], strides = [1, 1]} : vector<64x4xf32> to vector<16x4xf32>
    %32 = arith.maximumf %30, %31 : vector<16x4xf32>
    %33 = tpu.concatenate %32, %32, %32, %32 in 0 : vector<16x4xf32>, vector<16x4xf32>, vector<16x4xf32>, vector<16x4xf32> -> vector<64x4xf32>
    %34 = arith.subf %25, %33 : vector<64x4xf32>
    %35 = math.exp %34 : vector<64x4xf32>
    %36 = vector.extract_strided_slice %35 {offsets = [0, 0], sizes = [16, 4], strides = [1, 1]} : vector<64x4xf32> to vector<16x4xf32>
    %37 = vector.extract_strided_slice %35 {offsets = [16, 0], sizes = [16, 4], strides = [1, 1]} : vector<64x4xf32> to vector<16x4xf32>
    %38 = arith.addf %36, %37 : vector<16x4xf32>
    %39 = vector.extract_strided_slice %35 {offsets = [32, 0], sizes = [16, 4], strides = [1, 1]} : vector<64x4xf32> to vector<16x4xf32>
    %40 = arith.addf %38, %39 : vector<16x4xf32>
    %41 = vector.extract_strided_slice %35 {offsets = [48, 0], sizes = [16, 4], strides = [1, 1]} : vector<64x4xf32> to vector<16x4xf32>
    %42 = arith.addf %40, %41 : vector<16x4xf32>
    %43 = tpu.reciprocal %42 {approx = true} : vector<16x4xf32> -> vector<16x4xf32>
    %44 = tpu.concatenate %43, %43, %43, %43 in 0 : vector<16x4xf32>, vector<16x4xf32>, vector<16x4xf32>, vector<16x4xf32> -> vector<64x4xf32>
    %45 = arith.mulf %35, %44 : vector<64x4xf32>
    %cst_22 = arith.constant dense<0.000000e+00> : vector<64x32xf32>
    %46 = tpu.matmul %45, %20, %cst_22 {dimension_numbers = #tpu.dot_dimension_numbers<[1], [0], [0], [1], [0, 0, 1, 1], [], []>} : vector<64x4xf32>, vector<4x32xf32>, vector<64x32xf32> -> vector<64x32xf32>
    %47 = arith.mulf %46, %18 : vector<64x32xf32>
    %48 = vector.extract_strided_slice %47 {offsets = [0, 0], sizes = [16, 32], strides = [1, 1]} : vector<64x32xf32> to vector<16x32xf32>
    %49 = vector.extract_strided_slice %47 {offsets = [16, 0], sizes = [16, 32], strides = [1, 1]} : vector<64x32xf32> to vector<16x32xf32>
    %50 = arith.addf %48, %49 : vector<16x32xf32>
    %51 = vector.extract_strided_slice %47 {offsets = [32, 0], sizes = [16, 32], strides = [1, 1]} : vector<64x32xf32> to vector<16x32xf32>
    %52 = arith.addf %50, %51 : vector<16x32xf32>
    %53 = vector.extract_strided_slice %47 {offsets = [48, 0], sizes = [16, 32], strides = [1, 1]} : vector<64x32xf32> to vector<16x32xf32>
    %54 = arith.addf %52, %53 : vector<16x32xf32>
    %c0_23 = arith.constant 0 : index
    %c0_24 = arith.constant 0 : index
    %55 = vector.load %arg6[%c0_23, %c0_24] : memref<129x24xf32, #tpu.memory_space<vmem>>, vector<32x24xf32>
    %cst_25 = arith.constant dense<0.000000e+00> : vector<16x24xf32>
    %56 = tpu.matmul %54, %55, %cst_25 {dimension_numbers = #tpu.dot_dimension_numbers<[1], [0], [0], [1], [0, 0, 1, 1], [], []>} : vector<16x32xf32>, vector<32x24xf32>, vector<16x24xf32> -> vector<16x24xf32>
    %57 = arith.addf %21, %56 : vector<16x24xf32>
    %58 = vector.extract_strided_slice %6 {offsets = [16, 0], sizes = [16, 32], strides = [1, 1]} : vector<64x32xf32> to vector<16x32xf32>
    %59 = tpu.concatenate %58, %58, %58, %58 in 0 : vector<16x32xf32>, vector<16x32xf32>, vector<16x32xf32>, vector<16x32xf32> -> vector<64x32xf32>
    %60 = arith.mulf %59, %12 : vector<64x32xf32>
    %cst_26 = arith.constant dense<0.000000e+00> : vector<64x4xf32>
    %61 = tpu.matmul %60, %19, %cst_26 {dimension_numbers = #tpu.dot_dimension_numbers<[1], [0], [0], [1], [0, 0, 1, 1], [], []>} : vector<64x32xf32>, vector<32x4xf32>, vector<64x4xf32> -> vector<64x4xf32>
    %62 = vector.extract_strided_slice %61 {offsets = [0, 0], sizes = [16, 4], strides = [1, 1]} : vector<64x4xf32> to vector<16x4xf32>
    %63 = vector.extract_strided_slice %61 {offsets = [16, 0], sizes = [16, 4], strides = [1, 1]} : vector<64x4xf32> to vector<16x4xf32>
    %64 = arith.maximumf %62, %63 : vector<16x4xf32>
    %65 = vector.extract_strided_slice %61 {offsets = [32, 0], sizes = [16, 4], strides = [1, 1]} : vector<64x4xf32> to vector<16x4xf32>
    %66 = arith.maximumf %64, %65 : vector<16x4xf32>
    %67 = vector.extract_strided_slice %61 {offsets = [48, 0], sizes = [16, 4], strides = [1, 1]} : vector<64x4xf32> to vector<16x4xf32>
    %68 = arith.maximumf %66, %67 : vector<16x4xf32>
    %69 = tpu.concatenate %68, %68, %68, %68 in 0 : vector<16x4xf32>, vector<16x4xf32>, vector<16x4xf32>, vector<16x4xf32> -> vector<64x4xf32>
    %70 = arith.subf %61, %69 : vector<64x4xf32>
    %71 = math.exp %70 : vector<64x4xf32>
    %72 = vector.extract_strided_slice %71 {offsets = [0, 0], sizes = [16, 4], strides = [1, 1]} : vector<64x4xf32> to vector<16x4xf32>
    %73 = vector.extract_strided_slice %71 {offsets = [16, 0], sizes = [16, 4], strides = [1, 1]} : vector<64x4xf32> to vector<16x4xf32>
    %74 = arith.addf %72, %73 : vector<16x4xf32>
    %75 = vector.extract_strided_slice %71 {offsets = [32, 0], sizes = [16, 4], strides = [1, 1]} : vector<64x4xf32> to vector<16x4xf32>
    %76 = arith.addf %74, %75 : vector<16x4xf32>
    %77 = vector.extract_strided_slice %71 {offsets = [48, 0], sizes = [16, 4], strides = [1, 1]} : vector<64x4xf32> to vector<16x4xf32>
    %78 = arith.addf %76, %77 : vector<16x4xf32>
    %79 = tpu.reciprocal %78 {approx = true} : vector<16x4xf32> -> vector<16x4xf32>
    %80 = tpu.concatenate %79, %79, %79, %79 in 0 : vector<16x4xf32>, vector<16x4xf32>, vector<16x4xf32>, vector<16x4xf32> -> vector<64x4xf32>
    %81 = arith.mulf %71, %80 : vector<64x4xf32>
    %cst_27 = arith.constant dense<0.000000e+00> : vector<64x32xf32>
    %82 = tpu.matmul %81, %20, %cst_27 {dimension_numbers = #tpu.dot_dimension_numbers<[1], [0], [0], [1], [0, 0, 1, 1], [], []>} : vector<64x4xf32>, vector<4x32xf32>, vector<64x32xf32> -> vector<64x32xf32>
    %83 = arith.mulf %82, %18 : vector<64x32xf32>
    %84 = vector.extract_strided_slice %83 {offsets = [0, 0], sizes = [16, 32], strides = [1, 1]} : vector<64x32xf32> to vector<16x32xf32>
    %85 = vector.extract_strided_slice %83 {offsets = [16, 0], sizes = [16, 32], strides = [1, 1]} : vector<64x32xf32> to vector<16x32xf32>
    %86 = arith.addf %84, %85 : vector<16x32xf32>
    %87 = vector.extract_strided_slice %83 {offsets = [32, 0], sizes = [16, 32], strides = [1, 1]} : vector<64x32xf32> to vector<16x32xf32>
    %88 = arith.addf %86, %87 : vector<16x32xf32>
    %89 = vector.extract_strided_slice %83 {offsets = [48, 0], sizes = [16, 32], strides = [1, 1]} : vector<64x32xf32> to vector<16x32xf32>
    %90 = arith.addf %88, %89 : vector<16x32xf32>
    %c32 = arith.constant 32 : index
    %c0_28 = arith.constant 0 : index
    %91 = vector.load %arg6[%c32, %c0_28] : memref<129x24xf32, #tpu.memory_space<vmem>>, vector<32x24xf32>
    %cst_29 = arith.constant dense<0.000000e+00> : vector<16x24xf32>
    %92 = tpu.matmul %90, %91, %cst_29 {dimension_numbers = #tpu.dot_dimension_numbers<[1], [0], [0], [1], [0, 0, 1, 1], [], []>} : vector<16x32xf32>, vector<32x24xf32>, vector<16x24xf32> -> vector<16x24xf32>
    %93 = arith.addf %57, %92 : vector<16x24xf32>
    %94 = vector.extract_strided_slice %6 {offsets = [32, 0], sizes = [16, 32], strides = [1, 1]} : vector<64x32xf32> to vector<16x32xf32>
    %95 = tpu.concatenate %94, %94, %94, %94 in 0 : vector<16x32xf32>, vector<16x32xf32>, vector<16x32xf32>, vector<16x32xf32> -> vector<64x32xf32>
    %96 = arith.mulf %95, %12 : vector<64x32xf32>
    %cst_30 = arith.constant dense<0.000000e+00> : vector<64x4xf32>
    %97 = tpu.matmul %96, %19, %cst_30 {dimension_numbers = #tpu.dot_dimension_numbers<[1], [0], [0], [1], [0, 0, 1, 1], [], []>} : vector<64x32xf32>, vector<32x4xf32>, vector<64x4xf32> -> vector<64x4xf32>
    %98 = vector.extract_strided_slice %97 {offsets = [0, 0], sizes = [16, 4], strides = [1, 1]} : vector<64x4xf32> to vector<16x4xf32>
    %99 = vector.extract_strided_slice %97 {offsets = [16, 0], sizes = [16, 4], strides = [1, 1]} : vector<64x4xf32> to vector<16x4xf32>
    %100 = arith.maximumf %98, %99 : vector<16x4xf32>
    %101 = vector.extract_strided_slice %97 {offsets = [32, 0], sizes = [16, 4], strides = [1, 1]} : vector<64x4xf32> to vector<16x4xf32>
    %102 = arith.maximumf %100, %101 : vector<16x4xf32>
    %103 = vector.extract_strided_slice %97 {offsets = [48, 0], sizes = [16, 4], strides = [1, 1]} : vector<64x4xf32> to vector<16x4xf32>
    %104 = arith.maximumf %102, %103 : vector<16x4xf32>
    %105 = tpu.concatenate %104, %104, %104, %104 in 0 : vector<16x4xf32>, vector<16x4xf32>, vector<16x4xf32>, vector<16x4xf32> -> vector<64x4xf32>
    %106 = arith.subf %97, %105 : vector<64x4xf32>
    %107 = math.exp %106 : vector<64x4xf32>
    %108 = vector.extract_strided_slice %107 {offsets = [0, 0], sizes = [16, 4], strides = [1, 1]} : vector<64x4xf32> to vector<16x4xf32>
    %109 = vector.extract_strided_slice %107 {offsets = [16, 0], sizes = [16, 4], strides = [1, 1]} : vector<64x4xf32> to vector<16x4xf32>
    %110 = arith.addf %108, %109 : vector<16x4xf32>
    %111 = vector.extract_strided_slice %107 {offsets = [32, 0], sizes = [16, 4], strides = [1, 1]} : vector<64x4xf32> to vector<16x4xf32>
    %112 = arith.addf %110, %111 : vector<16x4xf32>
    %113 = vector.extract_strided_slice %107 {offsets = [48, 0], sizes = [16, 4], strides = [1, 1]} : vector<64x4xf32> to vector<16x4xf32>
    %114 = arith.addf %112, %113 : vector<16x4xf32>
    %115 = tpu.reciprocal %114 {approx = true} : vector<16x4xf32> -> vector<16x4xf32>
    %116 = tpu.concatenate %115, %115, %115, %115 in 0 : vector<16x4xf32>, vector<16x4xf32>, vector<16x4xf32>, vector<16x4xf32> -> vector<64x4xf32>
    %117 = arith.mulf %107, %116 : vector<64x4xf32>
    %cst_31 = arith.constant dense<0.000000e+00> : vector<64x32xf32>
    %118 = tpu.matmul %117, %20, %cst_31 {dimension_numbers = #tpu.dot_dimension_numbers<[1], [0], [0], [1], [0, 0, 1, 1], [], []>} : vector<64x4xf32>, vector<4x32xf32>, vector<64x32xf32> -> vector<64x32xf32>
    %119 = arith.mulf %118, %18 : vector<64x32xf32>
    %120 = vector.extract_strided_slice %119 {offsets = [0, 0], sizes = [16, 32], strides = [1, 1]} : vector<64x32xf32> to vector<16x32xf32>
    %121 = vector.extract_strided_slice %119 {offsets = [16, 0], sizes = [16, 32], strides = [1, 1]} : vector<64x32xf32> to vector<16x32xf32>
    %122 = arith.addf %120, %121 : vector<16x32xf32>
    %123 = vector.extract_strided_slice %119 {offsets = [32, 0], sizes = [16, 32], strides = [1, 1]} : vector<64x32xf32> to vector<16x32xf32>
    %124 = arith.addf %122, %123 : vector<16x32xf32>
    %125 = vector.extract_strided_slice %119 {offsets = [48, 0], sizes = [16, 32], strides = [1, 1]} : vector<64x32xf32> to vector<16x32xf32>
    %126 = arith.addf %124, %125 : vector<16x32xf32>
    %c64 = arith.constant 64 : index
    %c0_32 = arith.constant 0 : index
    %127 = vector.load %arg6[%c64, %c0_32] : memref<129x24xf32, #tpu.memory_space<vmem>>, vector<32x24xf32>
    %cst_33 = arith.constant dense<0.000000e+00> : vector<16x24xf32>
    %128 = tpu.matmul %126, %127, %cst_33 {dimension_numbers = #tpu.dot_dimension_numbers<[1], [0], [0], [1], [0, 0, 1, 1], [], []>} : vector<16x32xf32>, vector<32x24xf32>, vector<16x24xf32> -> vector<16x24xf32>
    %129 = arith.addf %93, %128 : vector<16x24xf32>
    %130 = vector.extract_strided_slice %6 {offsets = [48, 0], sizes = [16, 32], strides = [1, 1]} : vector<64x32xf32> to vector<16x32xf32>
    %131 = tpu.concatenate %130, %130, %130, %130 in 0 : vector<16x32xf32>, vector<16x32xf32>, vector<16x32xf32>, vector<16x32xf32> -> vector<64x32xf32>
    %132 = arith.mulf %131, %12 : vector<64x32xf32>
    %cst_34 = arith.constant dense<0.000000e+00> : vector<64x4xf32>
    %133 = tpu.matmul %132, %19, %cst_34 {dimension_numbers = #tpu.dot_dimension_numbers<[1], [0], [0], [1], [0, 0, 1, 1], [], []>} : vector<64x32xf32>, vector<32x4xf32>, vector<64x4xf32> -> vector<64x4xf32>
    %134 = vector.extract_strided_slice %133 {offsets = [0, 0], sizes = [16, 4], strides = [1, 1]} : vector<64x4xf32> to vector<16x4xf32>
    %135 = vector.extract_strided_slice %133 {offsets = [16, 0], sizes = [16, 4], strides = [1, 1]} : vector<64x4xf32> to vector<16x4xf32>
    %136 = arith.maximumf %134, %135 : vector<16x4xf32>
    %137 = vector.extract_strided_slice %133 {offsets = [32, 0], sizes = [16, 4], strides = [1, 1]} : vector<64x4xf32> to vector<16x4xf32>
    %138 = arith.maximumf %136, %137 : vector<16x4xf32>
    %139 = vector.extract_strided_slice %133 {offsets = [48, 0], sizes = [16, 4], strides = [1, 1]} : vector<64x4xf32> to vector<16x4xf32>
    %140 = arith.maximumf %138, %139 : vector<16x4xf32>
    %141 = tpu.concatenate %140, %140, %140, %140 in 0 : vector<16x4xf32>, vector<16x4xf32>, vector<16x4xf32>, vector<16x4xf32> -> vector<64x4xf32>
    %142 = arith.subf %133, %141 : vector<64x4xf32>
    %143 = math.exp %142 : vector<64x4xf32>
    %144 = vector.extract_strided_slice %143 {offsets = [0, 0], sizes = [16, 4], strides = [1, 1]} : vector<64x4xf32> to vector<16x4xf32>
    %145 = vector.extract_strided_slice %143 {offsets = [16, 0], sizes = [16, 4], strides = [1, 1]} : vector<64x4xf32> to vector<16x4xf32>
    %146 = arith.addf %144, %145 : vector<16x4xf32>
    %147 = vector.extract_strided_slice %143 {offsets = [32, 0], sizes = [16, 4], strides = [1, 1]} : vector<64x4xf32> to vector<16x4xf32>
    %148 = arith.addf %146, %147 : vector<16x4xf32>
    %149 = vector.extract_strided_slice %143 {offsets = [48, 0], sizes = [16, 4], strides = [1, 1]} : vector<64x4xf32> to vector<16x4xf32>
    %150 = arith.addf %148, %149 : vector<16x4xf32>
    %151 = tpu.reciprocal %150 {approx = true} : vector<16x4xf32> -> vector<16x4xf32>
    %152 = tpu.concatenate %151, %151, %151, %151 in 0 : vector<16x4xf32>, vector<16x4xf32>, vector<16x4xf32>, vector<16x4xf32> -> vector<64x4xf32>
    %153 = arith.mulf %143, %152 : vector<64x4xf32>
    %cst_35 = arith.constant dense<0.000000e+00> : vector<64x32xf32>
    %154 = tpu.matmul %153, %20, %cst_35 {dimension_numbers = #tpu.dot_dimension_numbers<[1], [0], [0], [1], [0, 0, 1, 1], [], []>} : vector<64x4xf32>, vector<4x32xf32>, vector<64x32xf32> -> vector<64x32xf32>
    %155 = arith.mulf %154, %18 : vector<64x32xf32>
    %156 = vector.extract_strided_slice %155 {offsets = [0, 0], sizes = [16, 32], strides = [1, 1]} : vector<64x32xf32> to vector<16x32xf32>
    %157 = vector.extract_strided_slice %155 {offsets = [16, 0], sizes = [16, 32], strides = [1, 1]} : vector<64x32xf32> to vector<16x32xf32>
    %158 = arith.addf %156, %157 : vector<16x32xf32>
    %159 = vector.extract_strided_slice %155 {offsets = [32, 0], sizes = [16, 32], strides = [1, 1]} : vector<64x32xf32> to vector<16x32xf32>
    %160 = arith.addf %158, %159 : vector<16x32xf32>
    %161 = vector.extract_strided_slice %155 {offsets = [48, 0], sizes = [16, 32], strides = [1, 1]} : vector<64x32xf32> to vector<16x32xf32>
    %162 = arith.addf %160, %161 : vector<16x32xf32>
    %c96 = arith.constant 96 : index
    %c0_36 = arith.constant 0 : index
    %163 = vector.load %arg6[%c96, %c0_36] : memref<129x24xf32, #tpu.memory_space<vmem>>, vector<32x24xf32>
    %cst_37 = arith.constant dense<0.000000e+00> : vector<16x24xf32>
    %164 = tpu.matmul %162, %163, %cst_37 {dimension_numbers = #tpu.dot_dimension_numbers<[1], [0], [0], [1], [0, 0, 1, 1], [], []>} : vector<16x32xf32>, vector<32x24xf32>, vector<16x24xf32> -> vector<16x24xf32>
    %165 = arith.addf %129, %164 : vector<16x24xf32>
    %c128 = arith.constant 128 : index
    %c0_38 = arith.constant 0 : index
    %166 = vector.load %arg6[%c128, %c0_38] : memref<129x24xf32, #tpu.memory_space<vmem>>, vector<1x24xf32>
    %167 = vector.broadcast %166 : vector<1x24xf32> to vector<16x24xf32>
    %168 = arith.addf %165, %167 : vector<16x24xf32>
    %c0_39 = arith.constant 0 : index
    %c0_40 = arith.constant 0 : index
    %169 = vector.load %arg7[%c0_39, %c0_40] : memref<16x24xf32, #tpu.memory_space<vmem>>, vector<16x24xf32>
    tpu.vector_store %arg7[%c0_39, %c0_40], %168 {strides = array<i32>} : memref<16x24xf32, #tpu.memory_space<vmem>>, vector<16x24xf32>,
    return
  }
  func.func @transform_0(%arg0: i32) -> (i32, i32) {
    %c0_i32 = arith.constant 0 : i32
    %c0_i32_0 = arith.constant 0 : i32
    %c0_i32_1 = arith.constant 0 : i32
    return %c0_i32, %c0_i32_0 : i32, i32
  }
  func.func @transform_1(%arg0: i32) -> (i32, i32, i32) {
    %c0_i32 = arith.constant 0 : i32
    %c0_i32_0 = arith.constant 0 : i32
    %c0_i32_1 = arith.constant 0 : i32
    %c0_i32_2 = arith.constant 0 : i32
    return %c0_i32, %c0_i32_0, %c0_i32_1 : i32, i32, i32
  }
  func.func @transform_2(%arg0: i32) -> (i32, i32) {
    %c0_i32 = arith.constant 0 : i32
    %c0_i32_0 = arith.constant 0 : i32
    %c0_i32_1 = arith.constant 0 : i32
    return %c0_i32, %c0_i32_0 : i32, i32
  }
  func.func @transform_3(%arg0: i32) -> (i32, i32) {
    %c0_i32 = arith.constant 0 : i32
    %c0_i32_0 = arith.constant 0 : i32
    %c0_i32_1 = arith.constant 0 : i32
    return %c0_i32, %c0_i32_0 : i32, i32
  }
  func.func @transform_4(%arg0: i32) -> (i32, i32) {
    %c0_i32 = arith.constant 0 : i32
    %c0_i32_0 = arith.constant 0 : i32
    %c0_i32_1 = arith.constant 0 : i32
    return %c0_i32, %c0_i32_0 : i32, i32
  }
  func.func @transform_5(%arg0: i32) -> (i32, i32) {
    %c0_i32 = arith.constant 0 : i32
    %c0_i32_0 = arith.constant 0 : i32
    %c0_i32_1 = arith.constant 0 : i32
    return %c0_i32, %c0_i32_0 : i32, i32
  }
  func.func @transform_6(%arg0: i32) -> (i32, i32) {
    %c0_i32 = arith.constant 0 : i32
    %c0_i32_0 = arith.constant 0 : i32
    %c0_i32_1 = arith.constant 0 : i32
    return %c0_i32, %c0_i32_0 : i32, i32
  }
}

</mosaic_0001>

<bundles_post_ra>
// kernel: gat_te_forward.2
= control target key start
LH: loop header
LB: loop body
LE: loop exit
PB: predicated region body
PF: predicated region fallthrough
CT: control target
= control target key end

     0   :  { %s1087_s27 = smov 0   ;;  %s1341_s0 = inlined_call_operand.vmem [shape: f32[4,16,16], index: 0, kind: input, shape index: {}]   ;;  %s1342_s1 = inlined_call_operand.vmem [shape: f32[4,16,16], index: 1, kind: input, shape index: {}]   ;;  %s1343_s2 = inlined_call_operand.vmem [shape: f32[4,2,16,128], index: 2, kind: input, shape index: {}]   ;;  %s1344_s3 = inlined_call_operand.vmem [shape: f32[17,24], index: 3, kind: input, shape index: {}]   ;;  %s1345_s4 = inlined_call_operand.vmem [shape: f32[4,2,24,280], index: 4, kind: input, shape index: {}]   ;;  %s1346_s5 = inlined_call_operand.vmem [shape: f32[4,5,128], index: 5, kind: input, shape index: {}]   ;;  %s1347_s6 = inlined_call_operand.vmem [shape: f32[16,128], index: 6, kind: input, shape index: {}]   ;;  %s1348_s7 = inlined_call_operand.vmem [shape: f32[128,16], index: 7, kind: input, shape index: {}]   ;;  %s1349_s8 = inlined_call_operand.vmem [shape: f32[64,32], index: 8, kind: output, shape index: {}]  }
   0x1 LB: > { %s1093_s28 = sadd.s32 4294967295, %s1039_s27   ;;  %p954_p0 = scmp.ge.s32.totalorder %s1039_s27, 1  ;;  %s1039_s27 = sphi %s1087_s27, %s18_s27  }
   0x2   : > { %p301_p1 = scmp.lt.s32.totalorder %s1039_s27, 5 }
   0x4   : > { %p302_p2 = pnand %p954_p0, %p301_p1 }
   0x5   : > { %p354_p3 = scmp.lt.s32.totalorder (!%p302_p2), %s1093_s28, 3 }
   0x6   : > { %305 = sbr.rel (%p302_p2) target bundleno = 1510 (0x5e6), region = 52 }
   0xb   : > { %v407_v0 = vld [vmem:[%s1344_s3 + $0x8] sm:$0xff]  ;;  %v406_v1 = vld [vmem:[%s1344_s3] sm:$0xff]  ;;  %s1105_s11 = scalar_select %p354_p3, %s1093_s28, 3  ;;  %vm410_vm0 = vcmask 130048   ;;  %v1011_v13 = vld [vmem:[%s1344_s3 + $0x10] ss:$0 sm:$0xff] }
   0xc   : > { %431 = vmatpush.msra.mxu0 %v407_v0  ;;  %999 = vmatpush.msra.mxu1 %v407_v0  ;;  %vm449_vm1 = vcmask 195584   ;;  %v1148_v18 = vld [vmem:[%s1348_s7 + $0x78] sm:$0xff]  ;;  %v1153_v19 = vld [vmem:[%s1348_s7 + $0x70] sm:$0xff]  ;;  %v1160_v20 = vld [vmem:[%s1348_s7 + $0x68] sm:$0xff]  ;;  %vm843_vm11 = vcmask 261120  }
   0xd   : > { %s996_s12 = sshll.u32 %s1105_s11, 4  ;;  %s1001_s13 = smul.u32 144, %s1105_s11  ;;  %v1166_v21 = vld [vmem:[%s1348_s7 + $0x60] sm:$0xff]  ;;  %v1172_v22 = vld [vmem:[%s1348_s7 + $0x58] sm:$0xff]  ;;  %v1178_v23 = vld [vmem:[%s1348_s7 + $0x50] sm:$0xff] }
   0xe   : > { %432 = vmatpush.msra.mxu0 %v406_v1  ;;  %1000 = vmatpush.msra.mxu1 %v406_v1  ;;  %s358_s16 = scalar_lea.vmem %s1341_s0, %s996_s12  ;;  %s962_s22 = sshll.u32 %s1105_s11, 3  ;;  %v1184_v24 = vld [vmem:[%s1348_s7 + $0x48] sm:$0xff]  ;;  %v1190_v25 = vld [vmem:[%s1348_s7 + $0x40] sm:$0xff]  ;;  %v1196_v26 = vld [vmem:[%s1348_s7 + $0x38] sm:$0xff] }
   0xf   : > { %s1117_s19 = scalar_lea.vmem %s1345_s4, %s1001_s13  ;;  %v384_v2 = vld [vmem:[%s358_s16] sm:$0xff]  ;;  %v385_v3 = vld [vmem:[%s358_s16 + $0x8] sm:$0xff]  ;;  %s1137_s25 = scalar_lea.vmem %s1346_s5, %s962_s22  ;;  %v1202_v27 = vld [vmem:[%s1348_s7 + $0x30] sm:$0xff] }
  0x10   : > { %965 = vmatmul.msk.f32.vlgmr.msra.gmra.mxu0 %vm410_vm0, %v384_v2  ;;  %966 = vmatmul.msk.f32.vlgmr.msra.gmra.mxu1 %vm410_vm0, %v385_v3  ;;  %v447_v4 = vld [vmem:[%s1117_s19 + $0x38] sm:$0xff]  ;;  %v446_v5 = vld [vmem:[%s1117_s19 + $0x30] sm:$0xff]  ;;  %v444_v6 = vld [vmem:[%s1117_s19 + $0x20] sm:$0xff]  ;;  %s998_s10 = sshll.u32 %s1105_s11, 5  ;;  %s363_s18 = scalar_lea.vmem %s1342_s1, %s996_s12 }
  0x11   : > { %492 = vmatpush.msrb.mxu0 %v447_v4  ;;  %469 = vmatpush.msrb.mxu1 %v446_v5  ;;  %v448_v7 = vld [vmem:[%s1117_s19 + $0x40] sm:$0xff]  ;;  %v443_v8 = vld [vmem:[%s1117_s19 + $0x18] sm:$0xff]  ;;  %v445_v9 = vld [vmem:[%s1117_s19 + $0x28] sm:$0xff]  ;;  %s1258_s15 = scalar_lea.vmem %s1343_s2, %s998_s10  ;;  %s1041_s11 = smov 24  }
  0x12   : > { %515 = vmatpush.msra.mxu3 %v448_v7  ;;  %v441_v10 = vld [vmem:[%s1117_s19 + $0x8] sm:$0xff]  ;;  %v440_v11 = vld [vmem:[%s1117_s19] sm:$0xff]  ;;  %v442_v12 = vld [vmem:[%s1117_s19 + $0x10] sm:$0xff]  ;;  %s963_s12 = sshll.u32 %s1093_s28, 1 }
  0x13   : > { %493 = vmatpush.msrb.mxu0 %v444_v6  ;;  %470 = vmatpush.msrb.mxu1 %v443_v8  ;;  %v1208_v28 = vld [vmem:[%s1348_s7 + $0x28] sm:$0xff]  ;;  %v1214_v29 = vld [vmem:[%s1348_s7 + $0x20] sm:$0xff]  ;;  %v1220_v30 = vld [vmem:[%s1348_s7 + $0x18] sm:$0xff]  ;;  %p379_p4 = scmp.lt.s32.totalorder %s963_s12, 7 }
  0x14   : > { %516 = vmatpush.msra.mxu3 %v445_v9  ;;  %v1225_v31 = vld [vmem:[%s1348_s7 + $0x10] sm:$0xff]  ;;  %v1231_v32 = vld [vmem:[%s1348_s7 + $0x8] sm:$0xff]  ;;  %v1237_v33 = vld [vmem:[%s1348_s7] sm:$0xff] }
  0x15   : > { %494 = vmatpush.msrb.mxu0 %v441_v10  ;;  %471 = vmatpush.msrb.mxu1 %v440_v11  ;;  %v1244_v35 = vld [vmem:[%s1347_s6] sm:$0xff]  ;;  %v1249_v36 = vld [vmem:[%s1347_s6 + $0x8] sm:$0xff]  ;;  %s1351_s12 = smov (!%p379_p4, %s963_s12), 7 }
  0x16   : > { %517 = vmatpush.msra.mxu3 %v442_v12  ;;  %v1012_v44 = vld [vmem:[%s1137_s25 + $0x1] ss:$0 sm:$0xff]  ;;  %v541_v57 = vld [vmem:[%s1258_s15 + $0x8] sm:$0xff]  ;;  %v1013_v59 = vld [vmem:[%s1137_s25] ss:$0 sm:$0xff] }
  0x17   : > { %554 = vmatpush.msra.mxu0 %v1148_v18  ;;  %v540_v54 = vld [vmem:[%s1258_s15] sm:$0xff]  ;;  %v1274_v7 = vld [vmem:[%s363_s18 + $0x8] sm:$0xff] }
  0x18   : > { %v1268_v3 = vld [vmem:[%s363_s18] sm:$0xff]  ;;  %vm578_vm5 = vcmp.gt.f32.partialorder %v1274_v7, 0.0 }
  0x19   : > { %555 = vmatpush.msra.mxu0 %v1153_v19  ;;  %vm577_vm4 = vcmp.gt.f32.partialorder %v1268_v3, 0.0 }
  0x1b   : > { %556 = vmatpush.msra.mxu0 %v1160_v20 }
  0x1d   : > { %557 = vmatpush.msra.mxu0 %v1166_v21 }
  0x1f   : > { %558 = vmatpush.msra.mxu0 %v1172_v22 }
  0x21   : > { %559 = vmatpush.msra.mxu0 %v1178_v23 }
  0x23   : > { %560 = vmatpush.msra.mxu0 %v1184_v24 }
  0x25   : > { %561 = vmatpush.msra.mxu0 %v1190_v25 }
  0x27   : > { %562 = vmatpush.msra.mxu0 %v1196_v26 }
  0x29   : > { %563 = vmatpush.msra.mxu0 %v1202_v27 }
  0x2b   : > { %564 = vmatpush.msra.mxu0 %v1208_v28 }
  0x2d   : > { %565 = vmatpush.msra.mxu0 %v1214_v29 }
  0x2f   : > { %566 = vmatpush.msra.mxu0 %v1220_v30 }
  0x31   : > { %567 = vmatpush.msra.mxu0 %v1225_v31 }
  0x33   : > { %568 = vmatpush.msra.mxu0 %v1231_v32 }
  0x35   : > { %569 = vmatpush.msra.mxu0 %v1237_v33 }
  0x8d   : > { %v434_v14 = vpop.f32.mrf.mxu0  ;;  %v437_v16 = vpop.f32.mrf.mxu1 }
  0x8e   : > { %v435_v15 = vadd.f32 %v1011_v13, %v434_v14  ;;  %v438_v17 = vadd.f32 %v1011_v13, %v437_v16 }
  0x90   : > { %967 = vmatmul.msk.f32.vlgmr.msrb.gmra.mxu1 %vm449_vm1, %v435_v15  ;;  %969 = vmatmul.msk.f32.vlgmr.msrb.gmra.mxu0 %vm449_vm1, %v435_v15 }
  0x91   : > { %971 = vmatmul.msk.f32.vlgmr.msra.gmra.mxu3 %vm449_vm1, %v435_v15 }
  0x98   : > { %968 = vmatmul.msk.f32.gmra.mxu1 %vm449_vm1, %v438_v17  ;;  %970 = vmatmul.msk.f32.gmra.mxu0 %vm449_vm1, %v438_v17 }
  0x99   : > { %972 = vmatmul.msk.f32.gmra.mxu3 %vm449_vm1, %v438_v17 }
 0x10d   : > { %v496_v34 = vpop.f32.mrf.mxu0  ;;  %v473_v43 = vpop.f32.mrf.mxu1 }
 0x10e   : > { %v529_v39 = vmul.f32 %v496_v34, %v1244_v35 }
 0x114   : > { %v519_v37 = vpop.f32.mrf.mxu3 }
 0x115   : > { %v499_v38 = vpop.f32.mrf.mxu0  ;;  %v527_v49 = vadd.f32 %v1012_v44, %v519_v37  ;;  %v476_v53 = vpop.f32.mrf.mxu1 }
 0x116   : > { %v530_v40 = vmul.f32 %v499_v38, %v1249_v36 }
 0x118   : > { %v531_v41 = vadd.f32 %v530_v40, %v529_v39  ;;  %v982_v39 = vld [vmem:[%s1117_s19 + $0x80] sm:$0xff]  ;;  %v979_v40 = vld [vmem:[%s1117_s19 + $0x68] sm:$0xff] }
 0x119   : > { %690 = vmatpush.msrb.mxu3 %v982_v39 }
 0x11a   : > { %v532_v42 = vrot.slane %v531_v41, 4 }
 0x11b   : > { %691 = vmatpush.msrb.mxu3 %v979_v40 }
 0x11c   : > { %v533_v45 = vadd.f32 %v532_v42, %v531_v41  ;;  %v522_v46 = vpop.f32.mrf.mxu3  ;;  %v981_v41 = vld [vmem:[%s1117_s19 + $0x78] sm:$0xff]  ;;  %v983_v42 = vld [vmem:[%s1117_s19 + $0x88] sm:$0xff] }
 0x11d   : > { %v528_v47 = vadd.f32 %v1012_v44, %v522_v46  ;;  %667 = vmatpush.msra.mxu2 %v981_v41 }
 0x11e   : > { %v534_v48 = vrot.slane %v533_v45, 2 }
 0x11f   : > { %623 = vmatpush.msra.mxu1 %v528_v47 }
 0x120   : > { %v535_v50 = vadd.f32 %v534_v48, %v533_v45 }
 0x121   : > { %624 = vmatpush.msra.mxu1 %v527_v49 }
 0x122   : > { %v536_v51 = vrot.slane %v535_v50, 1 }
 0x123   : > { %713 = vmatpush.msrb.mxu1 %v983_v42 }
 0x124   : > { %v537_v52 = vadd.f32 %v536_v51, %v535_v50  ;;  %v978_v50 = vld [vmem:[%s1117_s19 + $0x60] sm:$0xff]  ;;  %v980_v51 = vld [vmem:[%s1117_s19 + $0x70] sm:$0xff] }
 0x125   : > { %668 = vmatpush.msra.mxu2 %v978_v50  ;;  %714 = vmatpush.msrb.mxu1 %v980_v51 }
 0x126   : > { %v538_v55 = vadd.f32 %v537_v52, %v473_v43  ;;  %v539_v56 = vadd.f32 %v537_v52, %v476_v53  ;;  %v976_v43 = vld [vmem:[%s1117_s19 + $0x50] sm:$0xff]  ;;  %v975_v52 = vld [vmem:[%s1117_s19 + $0x48] sm:$0xff]  ;;  %v977_v53 = vld [vmem:[%s1117_s19 + $0x58] sm:$0xff]  ;;  %s964_s19 = sshll.u32 %s1351_s12, 3 }
 0x127   : > { %692 = vmatpush.msrb.mxu3 %v976_v43  ;;  %669 = vmatpush.msra.mxu2 %v975_v52  ;;  %v1016_v43 = vld [vmem:[%s1137_s25 + $0x4] ss:$0 sm:$0xff]  ;;  %s382_s21 = scalar_lea.vmem %s1349_s8, %s964_s19 }
 0x128   : > { %v542_v58 = vadd.f32 %v540_v54, %v538_v55  ;;  %v543_v61 = vadd.f32 %v541_v57, %v539_v56  ;;  %715 = vmatpush.msrb.mxu1 %v977_v53 }
 0x129   : > { %753 = vmatpush.msrb.mxu2 %v1148_v18 }
 0x12a   : > { %vm544_vm2 = vcmp.gt.f32.partialorder %v542_v58, 0.0  ;;  %v546_v60 = vmul.f32 0.01, %v542_v58  ;;  %v547_v0 = vmul.f32 0.01, %v543_v61  ;;  %vm545_vm3 = vcmp.gt.f32.partialorder %v543_v61, 0.0 }
 0x12b   : > { %754 = vmatpush.msrb.mxu2 %v1153_v19 }
 0x12c   : > { %v548_v62 = vsel %vm544_vm2, %v542_v58, %v546_v60  ;;  %v549_v1 = vsel %vm545_vm3, %v543_v61, %v547_v0 }
 0x12d   : > { %v552_v63 = vmul.f32 %v1013_v59, %v548_v62  ;;  %v553_v2 = vmul.f32 %v1013_v59, %v549_v1  ;;  %755 = vmatpush.msrb.mxu2 %v1160_v20  ;;  %v990_v62 = vld [vmem:[%s1258_s15 + $0x10] sm:$0xff]  ;;  %v991_v1 = vld [vmem:[%s1258_s15 + $0x18] sm:$0xff] }
 0x12f   : > { %570 = vmatmul.f32.vlgmr.msra.gmra.mxu0 %v552_v63  ;;  %756 = vmatpush.msrb.mxu2 %v1166_v21 }
 0x131   : > { %757 = vmatpush.msrb.mxu2 %v1172_v22 }
 0x133   : > { %758 = vmatpush.msrb.mxu2 %v1178_v23 }
 0x135   : > { %759 = vmatpush.msrb.mxu2 %v1184_v24 }
 0x137   : > { %573 = vmatmul.f32.gmra.mxu0 %v553_v2  ;;  %760 = vmatpush.msrb.mxu2 %v1190_v25 }
 0x139   : > { %761 = vmatpush.msrb.mxu2 %v1196_v26  ;;  %v1014_v26 = vld [vmem:[%s1137_s25 + $0x3] ss:$0 sm:$0xff] }
 0x13b   : > { %762 = vmatpush.msrb.mxu2 %v1202_v27 }
 0x13d   : > { %763 = vmatpush.msrb.mxu2 %v1208_v28 }
 0x13f   : > { %764 = vmatpush.msrb.mxu2 %v1214_v29 }
 0x141   : > { %765 = vmatpush.msrb.mxu2 %v1220_v30 }
 0x143   : > { %766 = vmatpush.msrb.mxu2 %v1225_v31 }
 0x145   : > { %767 = vmatpush.msrb.mxu2 %v1231_v32 }
 0x147   : > { %768 = vmatpush.msrb.mxu2 %v1237_v33 }
 0x1ac   : > { %v571_v4 = vpop.f32.mrf.mxu0 }
 0x1ad   : > { %v579_v5 = vsel %vm577_vm4, %v571_v4, -1e+30  ;;  %v1015_v4 = vld [vmem:[%s1137_s25 + $0x2] ss:$0 sm:$0xff] }
 0x1ae   : > { %v581_v6 = vsel %vm410_vm0, %v579_v5, -inf }
 0x1af   : > { %582 = vmax.xlane.f32.xlu0 %v581_v6 }
 0x1b4   : > { %v574_v8 = vpop.f32.mrf.mxu0 }
 0x1b5   : > { %v580_v9 = vsel %vm578_vm5, %v574_v8, -1e+30 }
 0x1b6   : > { %v584_v10 = vsel %vm410_vm0, %v580_v9, -inf }
 0x1b7   : > { %585 = vmax.xlane.f32.xlu0 %v584_v10 }
 0x222   : > { %v583_v11 = vpop.xlane.xlu0 %582 }
 0x223   : > { %v587_v12 = vsub.f32 %v579_v5, %v583_v11 }
 0x225   : > { %v589_v13 = vmul.f32 1.442695, %v587_v12 }
 0x227   : > { %1017 = vpow2.f32 %v589_v13 }
 0x22a   : > { %v586_v14 = vpop.xlane.xlu0 %585 }
 0x22b   : > { %v588_v15 = vsub.f32 %v580_v9, %v586_v14 }
 0x22d   : > { %v1018_v16 = vpop.eup %1017  ;;  %v591_v17 = vmul.f32 1.442695, %v588_v15 }
 0x22e   : > { %v593_v34 = vsel %vm410_vm0, %v1018_v16, 0.0 }
 0x22f   : > { %1019 = vpow2.f32 %v591_v17  ;;  %594 = vadd.xlane.f32.xlu1 %v593_v34 }
 0x235   : > { %v1020_v37 = vpop.eup %1019 }
 0x236   : > { %v596_v38 = vsel %vm410_vm0, %v1020_v37, 0.0 }
 0x237   : > { %597 = vadd.xlane.f32.xlu1 %v596_v38 }
 0x2a2   : > { %v595_v44 = vpop.xlane.xlu1 %594 }
 0x2a3   : > { %1021 = vrcp.f32 %v595_v44 }
 0x2a9   : > { %v1022_v45 = vpop.eup %1021 }
 0x2aa   : > { %v601_v46 = vmul.f32 %v1022_v45, %v1018_v16  ;;  %v598_v47 = vpop.xlane.xlu1 %597 }
 0x2ab   : > { %1023 = vrcp.f32 %v598_v47 }
 0x2ac   : > { %973 = vmatmul.msk.f32.vlgmr.msra.gmra.mxu1 %vm410_vm0, %v601_v46 }
 0x2b1   : > { %v1024_v48 = vpop.eup %1023 }
 0x2b2   : > { %v602_v49 = vmul.f32 %v1024_v48, %v1020_v37 }
 0x2b4   : > { %974 = vmatmul.msk.f32.gmra.mxu1 %vm410_vm0, %v602_v49 }
 0x329   : > { %v626_v18 = vpop.f32.mrf.mxu1 }
 0x32a   : > { %vm632_vm6 = vcmp.gt.f32.partialorder %v626_v18, 0.0  ;;  %v634_v19 = vmul.f32 0.01, %v626_v18 }
 0x32c   : > { %v636_v20 = vsel %vm632_vm6, %v626_v18, %v634_v19 }
 0x32d   : > { %984 = vmatmul.msk.f32.vlgmr.msra.gmra.mxu2 %vm449_vm1, %v636_v20  ;;  %986 = vmatmul.msk.f32.vlgmr.msrb.gmra.mxu3 %vm449_vm1, %v636_v20 }
 0x32e   : > { %988 = vmatmul.msk.f32.vlgmr.msrb.gmra.mxu1 %vm449_vm1, %v636_v20 }
 0x331   : > { %v629_v21 = vpop.f32.mrf.mxu1 }
 0x332   : > { %vm633_vm7 = vcmp.gt.f32.partialorder %v629_v21, 0.0  ;;  %v635_v22 = vmul.f32 0.01, %v629_v21 }
 0x334   : > { %v637_v23 = vsel %vm633_vm7, %v629_v21, %v635_v22 }
 0x335   : > { %985 = vmatmul.msk.f32.gmra.mxu2 %vm449_vm1, %v637_v23  ;;  %987 = vmatmul.msk.f32.gmra.mxu3 %vm449_vm1, %v637_v23 }
 0x336   : > { %989 = vmatmul.msk.f32.gmra.mxu1 %vm449_vm1, %v637_v23 }
 0x3ab   : > { %v717_v24 = vpop.f32.mrf.mxu1 }
 0x3ac   : > { %v725_v29 = vadd.f32 %v1014_v26, %v717_v24 }
 0x3b0   : > { %v694_v25 = vpop.f32.mrf.mxu3  ;;  %v671_v55 = vpop.f32.mrf.mxu2 }
 0x3b1   : > { %v727_v31 = vmul.f32 %v694_v25, %v1244_v35 }
 0x3b3   : > { %v720_v27 = vpop.f32.mrf.mxu1 }
 0x3b4   : > { %v726_v28 = vadd.f32 %v1014_v26, %v720_v27 }
 0x3b6   : > { %820 = vmatpush.msra.mxu3 %v726_v28 }
 0x3b8   : > { %821 = vmatpush.msra.mxu3 %v725_v29  ;;  %v697_v30 = vpop.f32.mrf.mxu3  ;;  %v674_v61 = vpop.f32.mrf.mxu2 }
 0x3b9   : > { %v728_v32 = vmul.f32 %v697_v30, %v1249_v36 }
 0x3bb   : > { %v729_v33 = vadd.f32 %v728_v32, %v727_v31 }
 0x3bd   : > { %v730_v54 = vrot.slane %v729_v33, 4 }
 0x3bf   : > { %v731_v56 = vadd.f32 %v730_v54, %v729_v33 }
 0x3c1   : > { %v732_v57 = vrot.slane %v731_v56, 2 }
 0x3c3   : > { %v733_v58 = vadd.f32 %v732_v57, %v731_v56 }
 0x3c5   : > { %v734_v59 = vrot.slane %v733_v58, 1 }
 0x3c7   : > { %v735_v60 = vadd.f32 %v734_v59, %v733_v58 }
 0x3c9   : > { %v736_v63 = vadd.f32 %v735_v60, %v671_v55  ;;  %v737_v0 = vadd.f32 %v735_v60, %v674_v61 }
 0x3cb   : > { %v741_v2 = vadd.f32 %v990_v62, %v736_v63  ;;  %v742_v5 = vadd.f32 %v991_v1, %v737_v0 }
 0x3cd   : > { %vm743_vm8 = vcmp.gt.f32.partialorder %v741_v2, 0.0  ;;  %v745_v35 = vmul.f32 0.01, %v741_v2  ;;  %v746_v8 = vmul.f32 0.01, %v742_v5  ;;  %vm744_vm9 = vcmp.gt.f32.partialorder %v742_v5, 0.0 }
 0x3cf   : > { %v747_v6 = vsel %vm743_vm8, %v741_v2, %v745_v35  ;;  %v748_v9 = vsel %vm744_vm9, %v742_v5, %v746_v8 }
 0x3d0   : > { %v751_v36 = vmul.f32 %v1015_v4, %v747_v6  ;;  %v752_v10 = vmul.f32 %v1015_v4, %v748_v9 }
 0x3d2   : > { %769 = vmatmul.f32.vlgmr.msrb.gmra.mxu2 %v751_v36 }
 0x3da   : > { %772 = vmatmul.f32.gmra.mxu2 %v752_v10 }
 0x455   : > { %v770_v11 = vpop.f32.mrf.mxu2 }
 0x456   : > { %v776_v12 = vsel %vm577_vm4, %v770_v11, -1e+30 }
 0x457   : > { %v778_v13 = vsel %vm410_vm0, %v776_v12, -inf }
 0x458   : > { %779 = vmax.xlane.f32.xlu2 %v778_v13 }
 0x45d   : > { %v773_v14 = vpop.f32.mrf.mxu2 }
 0x45e   : > { %v777_v15 = vsel %vm578_vm5, %v773_v14, -1e+30 }
 0x45f   : > { %v781_v16 = vsel %vm410_vm0, %v777_v15, -inf }
 0x460   : > { %782 = vmax.xlane.f32.xlu2 %v781_v16 }
 0x478   : > { %838 = vrot.lane.b32.xlu2 %v1016_v43, %s1041_s11 }
 0x4cb   : > { %v780_v17 = vpop.xlane.xlu2 %779 }
 0x4cc   : > { %v784_v34 = vsub.f32 %v776_v12, %v780_v17 }
 0x4ce   : > { %v786_v37 = vmul.f32 1.442695, %v784_v34 }
 0x4d0   : > { %1025 = vpow2.f32 %v786_v37 }
 0x4d3   : > { %v783_v38 = vpop.xlane.xlu2 %782 }
 0x4d4   : > { %v785_v39 = vsub.f32 %v777_v15, %v783_v38 }
 0x4d6   : > { %v1026_v40 = vpop.eup %1025  ;;  %v788_v3 = vmul.f32 1.442695, %v785_v39 }
 0x4d7   : > { %v790_v41 = vsel %vm410_vm0, %v1026_v40, 0.0 }
 0x4d8   : > { %1027 = vpow2.f32 %v788_v3  ;;  %791 = vadd.xlane.f32.xlu0 %v790_v41 }
 0x4db   : > { %v839_v52 = vpop.permute.xlu2 %838 }
 0x4de   : > { %v1028_v42 = vpop.eup %1027 }
 0x4df   : > { %v793_v7 = vsel %vm410_vm0, %v1028_v42, 0.0 }
 0x4e0   : > { %794 = vadd.xlane.f32.xlu1 %v793_v7 }
 0x54b   : > { %v792_v44 = vpop.xlane.xlu0 %791 }
 0x54c   : > { %1029 = vrcp.f32 %v792_v44 }
 0x552   : > { %v1030_v45 = vpop.eup %1029 }
 0x553   : > { %v798_v46 = vmul.f32 %v1030_v45, %v1026_v40  ;;  %v795_v47 = vpop.xlane.xlu1 %794 }
 0x554   : > { %1031 = vrcp.f32 %v795_v47 }
 0x555   : > { %992 = vmatmul.msk.f32.vlgmr.msra.gmra.mxu3 %vm410_vm0, %v798_v46 }
 0x55a   : > { %v1032_v48 = vpop.eup %1031 }
 0x55b   : > { %v799_v49 = vmul.f32 %v1032_v48, %v1028_v42 }
 0x55d   : > { %993 = vmatmul.msk.f32.gmra.mxu3 %vm410_vm0, %v799_v49 }
 0x5d8   : > { %v823_v50 = vpop.f32.mrf.mxu3 }
 0x5d9   : > { %vm829_vm10 = vcmp.gt.f32.partialorder %v823_v50, 0.0  ;;  %v831_v51 = vmul.f32 0.01, %v823_v50 }
 0x5db   : > { %v833_v53 = vsel %vm829_vm10, %v823_v50, %v831_v51 }
 0x5dc   : > { %v841_v18 = vsel %vm449_vm1, %v833_v53, %v839_v52 }
 0x5dd   : > { %844 = vst.msk [vmem:[%s382_s21] sm:$0xff] %vm843_vm11, %v841_v18 }
 0x5e0   : > { %v826_v19 = vpop.f32.mrf.mxu3 }
 0x5e1   : > { %vm830_vm12 = vcmp.gt.f32.partialorder %v826_v19, 0.0  ;;  %v832_v20 = vmul.f32 0.01, %v826_v19 }
 0x5e3   : > { %v834_v21 = vsel %vm830_vm12, %v826_v19, %v832_v20 }
 0x5e4   : > { %v842_v22 = vsel %vm449_vm1, %v834_v21, %v839_v52 }
 0x5e5   : > { %845 = vst.msk [vmem:[%s382_s21 + $0x8] sm:$0xff] %vm843_vm11, %v842_v22 }
 0x5e6 PF: > { %s18_s27 = sadd.s32 1, %s1039_s27  }
 0x5e7   : > { %p15_p5 = scmp.ge.s32.totalorder %s18_s27, 6  }
 0x5e9   :  { %17 = sbr.rel (!%p15_p5) target bundleno = 1 (0x1), region = 96 }

// kernel: gat_te_forward.3
= control target key start
LH: loop header
LB: loop body
LE: loop exit
PB: predicated region body
PF: predicated region fallthrough
CT: control target
= control target key end

     0   :  { %vm38_vm0 = vcmask 261120   ;;  %s1882_s0 = inlined_call_operand.vmem [shape: f32[64,32], index: 0, kind: input, shape index: {}]   ;;  %s1883_s1 = inlined_call_operand.vmem [shape: f32[3,32,32], index: 1, kind: input, shape index: {}]   ;;  %s1884_s2 = inlined_call_operand.vmem [shape: f32[3,32], index: 2, kind: input, shape index: {}]   ;;  %s1885_s3 = inlined_call_operand.vmem [shape: f32[32,4], index: 3, kind: input, shape index: {}]   ;;  %s1886_s4 = inlined_call_operand.vmem [shape: f32[4,32], index: 4, kind: input, shape index: {}]   ;;  %s1887_s5 = inlined_call_operand.vmem [shape: f32[129,24], index: 5, kind: input, shape index: {}]   ;;  %s1888_s6 = inlined_call_operand.hbm [shape: f32[16,24], index: 6, kind: output, shape index: {}]  }
   0x1   :  { %v35_v0 = vld [vmem:[%s1883_s1 + $0x18] sm:$0xff]  ;;  %v34_v2 = vld [vmem:[%s1883_s1 + $0x10] sm:$0xff]  ;;  %v33_v4 = vld [vmem:[%s1883_s1 + $0x8] sm:$0xff] }
   0x2   :  { %v1174_v1 = vld [vmem:[%s1883_s1 + $0x38] sm:$0xff]  ;;  %75 = vmatpush.msra.mxu0 %v35_v0  ;;  %v1173_v3 = vld [vmem:[%s1883_s1 + $0x30] sm:$0xff]  ;;  %v1172_v5 = vld [vmem:[%s1883_s1 + $0x28] sm:$0xff] }
   0x3   :  { %123 = vmatpush.msra.mxu1 %v1174_v1  ;;  %1271 = vmatpush.msra.mxu3 %v1174_v1  ;;  %v32_v6 = vld [vmem:[%s1883_s1] sm:$0xff]  ;;  %v1458_v9 = vld [vmem:[%s1882_s0 + $0x30] sm:$0xff] }
   0x4   :  { %76 = vmatpush.msra.mxu0 %v34_v2  ;;  %v1171_v7 = vld [vmem:[%s1883_s1 + $0x20] sm:$0xff] }
   0x5   :  { %124 = vmatpush.msra.mxu1 %v1173_v3  ;;  %1272 = vmatpush.msra.mxu3 %v1173_v3  ;;  %v1453_v8 = vld [vmem:[%s1882_s0] sm:$0xff] }
   0x6   :  { %77 = vmatpush.msra.mxu0 %v33_v4 }
   0x7   :  { %125 = vmatpush.msra.mxu1 %v1172_v5  ;;  %1273 = vmatpush.msra.mxu3 %v1172_v5 }
   0x8   :  { %11 = vsyncpa [#allocation3], 0  ;;  %78 = vmatpush.msra.mxu0 %v32_v6  ;;  %v1469_v10 = vld [vmem:[%s1882_s0 + $0x8] sm:$0xff]  ;;  %v1474_v11 = vld [vmem:[%s1882_s0 + $0x38] sm:$0xff]  ;;  %vm349_vm1 = vcmask 1043456   ;;  %vm324_vm2 = vcmask 31744  }
   0x9   :  { %126 = vmatpush.msra.mxu1 %v1171_v7  ;;  %1274 = vmatpush.msra.mxu3 %v1171_v7  ;;  %v1485_v12 = vld [vmem:[%s1882_s0 + $0x10] sm:$0xff]  ;;  %v1494_v13 = vld [vmem:[%s1882_s0 + $0x18] sm:$0xff]  ;;  %v1515_v16 = vld [vmem:[%s1885_s3 + $0x8] sm:$0xff]  ;;  %vm1142_vm3 = vcmask 195584   ;;  %s1388_s30 = smov [#allocation2]   ;;  %s1151_s10 = sshll.u32 %s1888_s6, 4  ;;  %s1152_s10 = int_to_ptr.hbm [resolvable:$true] %s1151_s10 }
   0xa   :  { %1163 = vmatmul.msk.f32.vlgmr.msra.gmra.mxu0 %vm38_vm0, %v1453_v8  ;;  %1175 = vmatmul.msk.f32.vlgmr.msra.gmra.mxu1 %vm38_vm0, %v1453_v8  ;;  %v1501_v14 = vld [vmem:[%s1885_s3 + $0x18] sm:$0xff]  ;;  %v1506_v15 = vld [vmem:[%s1885_s3 + $0x10] sm:$0xff]  ;;  %v1522_v17 = vld [vmem:[%s1882_s0 + $0x20] sm:$0xff]  ;;  %s1149_s7 = sshll.u32 %s1388_s30, 4  ;;  %s1389_s11 = smov 128   ;;  %s1150_s7 = int_to_ptr.vmem [resolvable:$true] %s1149_s7 }
   0xb   :  { %1181 = vmatmul.msk.f32.vlgmr.msra.gmra.mxu3 %vm38_vm0, %v1458_v9  ;;  %456 = vmatpush.msrb.mxu1 %v1501_v14  ;;  %v1533_v18 = vld [vmem:[%s1882_s0 + $0x28] sm:$0xff]  ;;  %v1546_v19 = vld [vmem:[%s1885_s3] sm:$0xff]  ;;  %s1390_s12 = smov 8  }
   0xc   :  { %249 = vmatpush.msrb.mxu3 %v1501_v14  ;;  %v1553_v20 = vld [vmem:[%s1884_s2] ss:$0 sm:$0xff]  ;;  %v1279_v21 = vld [vmem:[%s1884_s2 + $0x1] ss:$0 sm:$0xff] }
   0xd   :  { %457 = vmatpush.msrb.mxu1 %v1506_v15 }
   0xe   :  { %250 = vmatpush.msrb.mxu3 %v1506_v15 }
   0xf   :  { %458 = vmatpush.msrb.mxu1 %v1515_v16 }
  0x10   :  { %251 = vmatpush.msrb.mxu3 %v1515_v16 }
  0x11   :  { %459 = vmatpush.msrb.mxu1 %v1546_v19 }
  0x12   :  { %1164 = vmatmul.msk.f32.gmra.mxu0 %vm38_vm0, %v1469_v10  ;;  %1176 = vmatmul.msk.f32.gmra.mxu1 %vm38_vm0, %v1469_v10 }
  0x13   :  { %1182 = vmatmul.msk.f32.gmra.mxu3 %vm38_vm0, %v1474_v11 }
  0x14   :  { %252 = vmatpush.msrb.mxu3 %v1546_v19 }
  0x1a   :  { %1165 = vmatmul.msk.f32.gmra.mxu0 %vm38_vm0, %v1485_v12  ;;  %1177 = vmatmul.msk.f32.gmra.mxu1 %vm38_vm0, %v1485_v12 }
  0x22   :  { %1166 = vmatmul.msk.f32.gmra.mxu0 %vm38_vm0, %v1494_v13  ;;  %1178 = vmatmul.msk.f32.gmra.mxu1 %vm38_vm0, %v1494_v13 }
  0x2a   :  { %1167 = vmatmul.msk.f32.gmra.mxu0 %vm38_vm0, %v1522_v17  ;;  %1179 = vmatmul.msk.f32.gmra.mxu1 %vm38_vm0, %v1522_v17 }
  0x32   :  { %1168 = vmatmul.msk.f32.gmra.mxu0 %vm38_vm0, %v1533_v18  ;;  %1180 = vmatmul.msk.f32.gmra.mxu1 %vm38_vm0, %v1533_v18 }
  0x3a   :  { %1169 = vmatmul.msk.f32.gmra.mxu0 %vm38_vm0, %v1458_v9 }
  0x42   :  { %1170 = vmatmul.msk.f32.gmra.mxu0 %vm38_vm0, %v1474_v11 }
  0x87   :  { %v80_v22 = vpop.f32.mrf.mxu0  ;;  %v128_v24 = vpop.f32.mrf.mxu1 }
  0x88   :  { %v81_v23 = vadd.f32 %v1553_v20, %v80_v22  ;;  %v129_v25 = vadd.f32 %v1279_v21, %v128_v24 }
  0x8a   :  { %v205_v26 = vmul.f32 %v129_v25, %v81_v23 }
  0x8c   :  { %1195 = vmatmul.msk.f32.vlgmr.msrb.gmra.mxu3 %vm38_vm0, %v205_v26 }
  0x8e   :  { %v146_v48 = vpop.f32.mrf.mxu3 }
  0x8f   :  { %v83_v27 = vpop.f32.mrf.mxu0  ;;  %v131_v29 = vpop.f32.mrf.mxu1  ;;  %v147_v54 = vadd.f32 %v1279_v21, %v146_v48 }
  0x90   :  { %v1561_v28 = vadd.f32 %v1553_v20, %v83_v27  ;;  %v132_v30 = vadd.f32 %v1279_v21, %v131_v29 }
  0x91   :  { %v211_v27 = vmul.f32 %v147_v54, %v81_v23 }
  0x92   :  { %v206_v31 = vmul.f32 %v132_v30, %v1561_v28 }
  0x94   :  { %1196 = vmatmul.msk.f32.gmra.mxu3 %vm38_vm0, %v206_v31 }
  0x96   :  { %v149_v1 = vpop.f32.mrf.mxu3 }
  0x97   :  { %v86_v32 = vpop.f32.mrf.mxu0  ;;  %v134_v34 = vpop.f32.mrf.mxu1  ;;  %v150_v2 = vadd.f32 %v1279_v21, %v149_v1 }
  0x98   :  { %v1566_v33 = vadd.f32 %v1553_v20, %v86_v32  ;;  %v135_v35 = vadd.f32 %v1279_v21, %v134_v34 }
  0x9a   :  { %v412_v36 = vmul.f32 %v129_v25, %v1566_v33  ;;  %v207_v37 = vmul.f32 %v135_v35, %v81_v23  ;;  %v414_v50 = vmul.f32 %v135_v35, %v1566_v33 }
  0x9c   :  { %1212 = vmatmul.msk.f32.vlgmr.msrb.gmra.mxu1 %vm38_vm0, %v412_v36  ;;  %1197 = vmatmul.msk.f32.gmra.mxu3 %vm38_vm0, %v207_v37  ;;  %v212_v36 = vmul.f32 %v150_v2, %v1561_v28  ;;  %v1184_v37 = vld [vmem:[%s1883_s1 + $0x48] sm:$0xff] }
  0x9f   :  { %v89_v38 = vpop.f32.mrf.mxu0  ;;  %v137_v40 = vpop.f32.mrf.mxu1 }
  0xa0   :  { %v90_v39 = vadd.f32 %v1553_v20, %v89_v38  ;;  %v138_v41 = vadd.f32 %v1279_v21, %v137_v40  ;;  %v1183_v38 = vld [vmem:[%s1883_s1 + $0x40] sm:$0xff] }
  0xa2   :  { %v413_v42 = vmul.f32 %v132_v30, %v90_v39  ;;  %v208_v43 = vmul.f32 %v138_v41, %v1561_v28  ;;  %v415_v60 = vmul.f32 %v138_v41, %v90_v39 }
  0xa4   :  { %1213 = vmatmul.msk.f32.gmra.mxu1 %vm38_vm0, %v413_v42  ;;  %1198 = vmatmul.msk.f32.gmra.mxu3 %vm38_vm0, %v208_v43 }
  0xa7   :  { %v92_v44 = vpop.f32.mrf.mxu0  ;;  %v140_v46 = vpop.f32.mrf.mxu1 }
  0xa8   :  { %v93_v45 = vadd.f32 %v1553_v20, %v92_v44  ;;  %v141_v47 = vadd.f32 %v1279_v21, %v140_v46 }
  0xaa   :  { %v1576_v49 = vmul.f32 %v129_v25, %v93_v45  ;;  %v1579_v51 = vmul.f32 %v135_v35, %v93_v45  ;;  %v209_v52 = vmul.f32 %v141_v47, %v81_v23  ;;  %v1581_v53 = vmul.f32 %v141_v47, %v93_v45 }
  0xab   :  { %v1586_v59 = vmul.f32 %v147_v54, %v93_v45  ;;  %v416_v5 = vmul.f32 %v141_v47, %v1566_v33  ;;  %v418_v23 = vmul.f32 %v147_v54, %v1566_v33  ;;  %v1638_v33 = vld [vmem:[%s1886_s4] sm:$0xf] }
  0xac   :  { %1214 = vmatmul.msk.f32.gmra.mxu1 %vm38_vm0, %v414_v50  ;;  %1199 = vmatmul.msk.f32.gmra.mxu3 %vm38_vm0, %v209_v52 }
  0xad   :  { %1203 = vmatpush.msk.msrb.mxu0 %vm349_vm1, %v1638_v33 }
  0xaf   :  { %v95_v55 = vpop.f32.mrf.mxu0  ;;  %v143_v57 = vpop.f32.mrf.mxu1  ;;  %1241 = vmatpush.msk.msra.mxu0 %vm349_vm1, %v1638_v33 }
  0xb0   :  { %v96_v56 = vadd.f32 %v1553_v20, %v95_v55  ;;  %v144_v58 = vadd.f32 %v1279_v21, %v143_v57 }
  0xb2   :  { %v1588_v61 = vmul.f32 %v132_v30, %v96_v56  ;;  %v1590_v62 = vmul.f32 %v138_v41, %v96_v56  ;;  %v210_v63 = vmul.f32 %v144_v58, %v1561_v28  ;;  %v1593_v0 = vmul.f32 %v144_v58, %v96_v56  ;;  %v1185_v28 = vld [vmem:[%s1883_s1 + $0x50] sm:$0xff] }
  0xb3   :  { %v1599_v6 = vmul.f32 %v150_v2, %v96_v56  ;;  %v417_v31 = vmul.f32 %v144_v58, %v90_v39 }
  0xb4   :  { %1215 = vmatmul.msk.f32.gmra.mxu1 %vm38_vm0, %v415_v60  ;;  %1200 = vmatmul.msk.f32.gmra.mxu3 %vm38_vm0, %v210_v63 }
  0xb7   :  { %v98_v3 = vpop.f32.mrf.mxu0 }
  0xb8   :  { %v99_v4 = vadd.f32 %v1553_v20, %v98_v3 }
  0xba   :  { %v1601_v7 = vmul.f32 %v129_v25, %v99_v4  ;;  %v1603_v22 = vmul.f32 %v135_v35, %v99_v4  ;;  %v1605_v24 = vmul.f32 %v141_v47, %v99_v4  ;;  %v1607_v26 = vmul.f32 %v147_v54, %v99_v4 }
  0xbc   :  { %1216 = vmatmul.msk.f32.gmra.mxu1 %vm38_vm0, %v416_v5  ;;  %1201 = vmatmul.msk.f32.gmra.mxu3 %vm38_vm0, %v211_v27 }
  0xbf   :  { %v101_v21 = vpop.f32.mrf.mxu0 }
  0xc0   :  { %v102_v29 = vadd.f32 %v1553_v20, %v101_v21  ;;  %v419_v20 = vmul.f32 %v150_v2, %v90_v39 }
  0xc2   :  { %v1612_v32 = vmul.f32 %v132_v30, %v102_v29  ;;  %v1614_v34 = vmul.f32 %v138_v41, %v102_v29  ;;  %v1616_v25 = vmul.f32 %v144_v58, %v102_v29  ;;  %v1618_v35 = vmul.f32 %v150_v2, %v102_v29  ;;  %v1186_v30 = vld [vmem:[%s1883_s1 + $0x58] sm:$0xff] }
  0xc3   :  { %171 = vmatpush.msra.mxu2 %v1186_v30 }
  0xc4   :  { %1217 = vmatmul.msk.f32.gmra.mxu1 %vm38_vm0, %v417_v31  ;;  %1202 = vmatmul.msk.f32.gmra.mxu3 %vm38_vm0, %v212_v36 }
  0xc5   :  { %172 = vmatpush.msra.mxu2 %v1185_v28 }
  0xc7   :  { %173 = vmatpush.msra.mxu2 %v1184_v37 }
  0xc9   :  { %174 = vmatpush.msra.mxu2 %v1183_v38 }
  0xca   :  { %1187 = vmatmul.msk.f32.vlgmr.msra.gmra.mxu2 %vm38_vm0, %v1453_v8 }
  0xcb   :  { %1220 = vmatpush.msk.msrb.mxu2 %vm349_vm1, %v1638_v33 }
  0xcc   :  { %1218 = vmatmul.msk.f32.gmra.mxu1 %vm38_vm0, %v418_v23 }
  0xcd   :  { %949 = vmatpush.msra.mxu2 %v1501_v14 }
  0xcf   :  { %950 = vmatpush.msra.mxu2 %v1506_v15 }
  0xd1   :  { %951 = vmatpush.msra.mxu2 %v1515_v16 }
  0xd2   :  { %1188 = vmatmul.msk.f32.gmra.mxu2 %vm38_vm0, %v1469_v10 }
  0xd3   :  { %952 = vmatpush.msra.mxu2 %v1546_v19 }
  0xd4   :  { %1219 = vmatmul.msk.f32.gmra.mxu1 %vm38_vm0, %v419_v20 }
  0xda   :  { %1189 = vmatmul.msk.f32.gmra.mxu2 %vm38_vm0, %v1485_v12 }
  0xe2   :  { %1190 = vmatmul.msk.f32.gmra.mxu2 %vm38_vm0, %v1494_v13 }
  0xea   :  { %1191 = vmatmul.msk.f32.gmra.mxu2 %vm38_vm0, %v1522_v17 }
  0xf2   :  { %1192 = vmatmul.msk.f32.gmra.mxu2 %vm38_vm0, %v1533_v18 }
  0xfa   :  { %1193 = vmatmul.msk.f32.gmra.mxu2 %vm38_vm0, %v1458_v9 }
 0x102   :  { %1194 = vmatmul.msk.f32.gmra.mxu2 %vm38_vm0, %v1474_v11 }
 0x10f   :  { %v254_v39 = vpop.f32.mrf.mxu3 }
 0x117   :  { %v257_v40 = vpop.f32.mrf.mxu3 }
 0x119   :  { %v461_v8 = vpop.f32.mrf.mxu1 }
 0x11f   :  { %v260_v41 = vpop.f32.mrf.mxu3 }
 0x120   :  { %v278_v13 = vmax.f32 %v254_v39, %v260_v41 }
 0x121   :  { %v1661_v42 = vpop.f32.mrf.mxu1 }
 0x127   :  { %v263_v43 = vpop.f32.mrf.mxu3 }
 0x128   :  { %v279_v56 = vmax.f32 %v257_v40, %v263_v43 }
 0x129   :  { %v467_v44 = vpop.f32.mrf.mxu1 }
 0x12a   :  { %v485_v60 = vmax.f32 %v461_v8, %v467_v44 }
 0x12f   :  { %v266_v10 = vpop.f32.mrf.mxu3 }
 0x130   :  { %v280_v47 = vmax.f32 %v278_v13, %v266_v10 }
 0x131   :  { %v1667_v45 = vpop.f32.mrf.mxu1 }
 0x137   :  { %v269_v12 = vpop.f32.mrf.mxu3 }
 0x138   :  { %v281_v63 = vmax.f32 %v279_v56, %v269_v12 }
 0x139   :  { %v473_v46 = vpop.f32.mrf.mxu1 }
 0x13a   :  { %v487_v1 = vmax.f32 %v485_v60, %v473_v46 }
 0x13f   :  { %v272_v48 = vpop.f32.mrf.mxu3 }
 0x140   :  { %v282_v17 = vmax.f32 %v280_v47, %v272_v48 }
 0x141   :  { %v1673_v50 = vpop.f32.mrf.mxu1 }
 0x142   :  { %v284_v52 = vsub.f32 %v254_v39, %v282_v17  ;;  %v286_v54 = vsub.f32 %v260_v41, %v282_v17  ;;  %v288_v18 = vsub.f32 %v266_v10, %v282_v17  ;;  %v290_v55 = vsub.f32 %v272_v48, %v282_v17 }
 0x143   :  { %v486_v39 = vmax.f32 %v1661_v42, %v1667_v45 }
 0x144   :  { %v292_v57 = vmul.f32 1.442695, %v284_v52  ;;  %v296_v58 = vmul.f32 1.442695, %v286_v54  ;;  %v300_v9 = vmul.f32 1.442695, %v288_v18 }
 0x145   :  { %v304_v2 = vmul.f32 1.442695, %v290_v55 }
 0x146   :  { %1282 = vpow2.f32 %v292_v57 }
 0x147   :  { %1284 = vpow2.f32 %v296_v58  ;;  %v275_v3 = vpop.f32.mrf.mxu3 }
 0x148   :  { %v283_v11 = vmax.f32 %v281_v63, %v275_v3  ;;  %1286 = vpow2.f32 %v300_v9 }
 0x149   :  { %v479_v4 = vpop.f32.mrf.mxu1  ;;  %1288 = vpow2.f32 %v304_v2 }
 0x14a   :  { %v489_v5 = vmax.f32 %v487_v1, %v479_v4  ;;  %v285_v27 = vsub.f32 %v257_v40, %v283_v11  ;;  %v287_v21 = vsub.f32 %v263_v43, %v283_v11  ;;  %v289_v29 = vsub.f32 %v269_v12, %v283_v11 }
 0x14b   :  { %v291_v31 = vsub.f32 %v275_v3, %v283_v11 }
 0x14c   :  { %v491_v36 = vsub.f32 %v461_v8, %v489_v5  ;;  %v493_v23 = vsub.f32 %v467_v44, %v489_v5  ;;  %v1283_v20 = vpop.eup %1282  ;;  %v294_v30 = vmul.f32 1.442695, %v285_v27  ;;  %v298_v28 = vmul.f32 1.442695, %v287_v21 }
 0x14d   :  { %v302_v37 = vmul.f32 1.442695, %v289_v29  ;;  %v1675_v38 = vpop.eup %1284  ;;  %v306_v41 = vmul.f32 1.442695, %v291_v31  ;;  %v495_v10 = vsub.f32 %v473_v46, %v489_v5  ;;  %v497_v40 = vsub.f32 %v479_v4, %v489_v5 }
 0x14e   :  { %v308_v13 = vadd.f32 %v1675_v38, %v1283_v20  ;;  %1290 = vpow2.f32 %v294_v30  ;;  %v499_v43 = vmul.f32 1.442695, %v491_v36  ;;  %v1680_v12 = vpop.eup %1286  ;;  %v488_v8 = vmax.f32 %v486_v39, %v1673_v50 }
 0x14f   :  { %1292 = vpow2.f32 %v298_v28  ;;  %v503_v44 = vmul.f32 1.442695, %v493_v23  ;;  %v1684_v17 = vpop.eup %1288  ;;  %v507_v52 = vmul.f32 1.442695, %v495_v10  ;;  %v511_v18 = vmul.f32 1.442695, %v497_v40 }
 0x150   :  { %v310_v47 = vadd.f32 %v1680_v12, %v308_v13  ;;  %1294 = vpow2.f32 %v302_v37 }
 0x151   :  { %v482_v48 = vpop.f32.mrf.mxu1  ;;  %1296 = vpow2.f32 %v306_v41 }
 0x152   :  { %v490_v46 = vmax.f32 %v488_v8, %v482_v48  ;;  %v312_v54 = vadd.f32 %v1684_v17, %v310_v47  ;;  %1298 = vpow2.f32 %v499_v43 }
 0x153   :  { %1300 = vpow2.f32 %v503_v44 }
 0x154   :  { %v492_v55 = vsub.f32 %v1661_v42, %v490_v46  ;;  %v494_v56 = vsub.f32 %v1667_v45, %v490_v46  ;;  %v496_v57 = vsub.f32 %v1673_v50, %v490_v46  ;;  %v1291_v58 = vpop.eup %1290  ;;  %1302 = vrcp.f32 %v312_v54 }
 0x155   :  { %v498_v60 = vsub.f32 %v482_v48, %v490_v46  ;;  %v1293_v9 = vpop.eup %1292  ;;  %1304 = vpow2.f32 %v507_v52 }
 0x156   :  { %v501_v63 = vmul.f32 1.442695, %v492_v55  ;;  %v505_v1 = vmul.f32 1.442695, %v494_v56  ;;  %v1295_v2 = vpop.eup %1294  ;;  %v309_v3 = vadd.f32 %v1293_v9, %v1291_v58  ;;  %1306 = vpow2.f32 %v511_v18 }
 0x157   :  { %v509_v11 = vmul.f32 1.442695, %v496_v57  ;;  %v1297_v4 = vpop.eup %1296  ;;  %v513_v5 = vmul.f32 1.442695, %v498_v60 }
 0x158   :  { %1308 = vpow2.f32 %v501_v63  ;;  %v1299_v27 = vpop.eup %1298  ;;  %v311_v42 = vadd.f32 %v1295_v2, %v309_v3  ;;  %v176_v63 = vpop.f32.mrf.mxu2 }
 0x159   :  { %1310 = vpow2.f32 %v505_v1  ;;  %v1301_v45 = vpop.eup %1300 }
 0x15a   :  { %v1303_v21 = vpop.eup %1302  ;;  %v313_v50 = vadd.f32 %v1297_v4, %v311_v42  ;;  %v515_v29 = vadd.f32 %v1301_v45, %v1299_v27  ;;  %1312 = vpow2.f32 %v509_v11  ;;  %v613_v11 = vld [vmem:[%s1887_s5 + $0x38] sm:$0xff]  ;;  %v610_v42 = vld [vmem:[%s1887_s5 + $0x20] sm:$0xff] }
 0x15b   :  { %v1305_v31 = vpop.eup %1304  ;;  %1314 = vpow2.f32 %v513_v5  ;;  %v316_v36 = vmul.f32 %v1303_v21, %v1283_v20  ;;  %v318_v52 = vmul.f32 %v1303_v21, %v1675_v38  ;;  %v320_v55 = vmul.f32 %v1303_v21, %v1680_v12  ;;  %632 = vmatpush.msra.mxu3 %v613_v11 }
 0x15c   :  { %v1307_v23 = vpop.eup %1306  ;;  %1316 = vrcp.f32 %v313_v50  ;;  %v517_v30 = vadd.f32 %v1305_v31, %v515_v29  ;;  %v411_v50 = vld [vmem:[%s1887_s5 + $0x18] sm:$0xff] }
 0x15d   :  { %1204 = vmatmul.msk.f32.vlgmr.msrb.gmra.mxu0 %vm324_vm2, %v316_v36  ;;  %v409_v36 = vld [vmem:[%s1887_s5 + $0x8] sm:$0xff] }
 0x15e   :  { %v1309_v28 = vpop.eup %1308  ;;  %v519_v39 = vadd.f32 %v1307_v23, %v517_v30  ;;  %v408_v30 = vld [vmem:[%s1887_s5] sm:$0xff] }
 0x15f   :  { %v1311_v37 = vpop.eup %1310 }
 0x160   :  { %v516_v41 = vadd.f32 %v1311_v37, %v1309_v28  ;;  %v1313_v10 = vpop.eup %1312  ;;  %1318 = vrcp.f32 %v519_v39 }
 0x161   :  { %v1315_v13 = vpop.eup %1314 }
 0x162   :  { %v518_v40 = vadd.f32 %v1313_v10, %v516_v41  ;;  %v1317_v43 = vpop.eup %1316 }
 0x163   :  { %v317_v44 = vmul.f32 %v1317_v43, %v1291_v58  ;;  %v319_v54 = vmul.f32 %v1317_v43, %v1293_v9  ;;  %v321_v57 = vmul.f32 %v1317_v43, %v1295_v2  ;;  %v322_v58 = vmul.f32 %v1303_v21, %v1684_v17  ;;  %v179_v2 = vpop.f32.mrf.mxu2 }
 0x164   :  { %v520_v8 = vadd.f32 %v1315_v13, %v518_v40  ;;  %v323_v9 = vmul.f32 %v1317_v43, %v1297_v4 }
 0x165   :  { %1205 = vmatmul.msk.f32.gmra.mxu0 %vm324_vm2, %v317_v44 }
 0x166   :  { %1320 = vrcp.f32 %v520_v8  ;;  %v1319_v20 = vpop.eup %1318 }
 0x167   :  { %v523_v47 = vmul.f32 %v1319_v20, %v1299_v27  ;;  %v525_v18 = vmul.f32 %v1319_v20, %v1301_v45  ;;  %v527_v38 = vmul.f32 %v1319_v20, %v1305_v31  ;;  %v529_v12 = vmul.f32 %v1319_v20, %v1307_v23 }
 0x169   :  { %1221 = vmatmul.msk.f32.vlgmr.msrb.gmra.mxu2 %vm324_vm2, %v523_v47 }
 0x16b   :  { %v182_v17 = vpop.f32.mrf.mxu2 }
 0x16c   :  { %v1321_v48 = vpop.eup %1320 }
 0x16d   :  { %1206 = vmatmul.msk.f32.gmra.mxu0 %vm324_vm2, %v318_v52  ;;  %v524_v46 = vmul.f32 %v1321_v48, %v1309_v28  ;;  %v526_v56 = vmul.f32 %v1321_v48, %v1311_v37  ;;  %v528_v60 = vmul.f32 %v1321_v48, %v1313_v10  ;;  %v530_v1 = vmul.f32 %v1321_v48, %v1315_v13  ;;  %v1280_v37 = vld [vmem:[%s1884_s2 + $0x2] ss:$0 sm:$0xff] }
 0x16e   :  { %v1752_v41 = vadd.f32 %v1280_v37, %v182_v17  ;;  %v1754_v10 = vadd.f32 %v1280_v37, %v176_v63 }
 0x171   :  { %1222 = vmatmul.msk.f32.gmra.mxu2 %vm324_vm2, %v524_v46 }
 0x173   :  { %v185_v3 = vpop.f32.mrf.mxu2 }
 0x174   :  { %v1763_v52 = vadd.f32 %v1280_v37, %v185_v3 }
 0x175   :  { %1207 = vmatmul.msk.f32.gmra.mxu0 %vm324_vm2, %v319_v54 }
 0x179   :  { %1223 = vmatmul.msk.f32.gmra.mxu2 %vm324_vm2, %v525_v18  ;;  %v1766_v18 = vadd.f32 %v1280_v37, %v179_v2 }
 0x17b   :  { %v188_v4 = vpop.f32.mrf.mxu2 }
 0x17c   :  { %v1756_v13 = vadd.f32 %v1280_v37, %v188_v4 }
 0x17d   :  { %1208 = vmatmul.msk.f32.gmra.mxu0 %vm324_vm2, %v320_v55 }
 0x181   :  { %1224 = vmatmul.msk.f32.gmra.mxu2 %vm324_vm2, %v526_v56 }
 0x185   :  { %1209 = vmatmul.msk.f32.gmra.mxu0 %vm324_vm2, %v321_v57 }
 0x189   :  { %1225 = vmatmul.msk.f32.gmra.mxu2 %vm324_vm2, %v527_v38 }
 0x18d   :  { %1210 = vmatmul.msk.f32.gmra.mxu0 %vm324_vm2, %v322_v58 }
 0x191   :  { %1226 = vmatmul.msk.f32.gmra.mxu2 %vm324_vm2, %v528_v60 }
 0x195   :  { %1211 = vmatmul.msk.f32.gmra.mxu0 %vm324_vm2, %v323_v9 }
 0x199   :  { %1227 = vmatmul.msk.f32.gmra.mxu2 %vm324_vm2, %v529_v12 }
 0x1a1   :  { %1228 = vmatmul.msk.f32.gmra.mxu2 %vm324_vm2, %v530_v1 }
 0x1a9   :  { %1252 = vmatmul.msk.f32.vlgmr.msra.gmra.mxu2 %vm38_vm0, %v1601_v7  ;;  %v612_v7 = vld [vmem:[%s1887_s5 + $0x30] sm:$0xff] }
 0x1aa   :  { %633 = vmatpush.msra.mxu3 %v612_v7 }
 0x1b1   :  { %1253 = vmatmul.msk.f32.gmra.mxu2 %vm38_vm0, %v1612_v32  ;;  %v191_v32 = vpop.f32.mrf.mxu2 }
 0x1b2   :  { %v1768_v55 = vadd.f32 %v1280_v37, %v191_v32 }
 0x1b9   :  { %1254 = vmatmul.msk.f32.gmra.mxu2 %vm38_vm0, %v1603_v22  ;;  %v194_v22 = vpop.f32.mrf.mxu2 }
 0x1ba   :  { %v1761_v44 = vadd.f32 %v1280_v37, %v194_v22 }
 0x1c1   :  { %1255 = vmatmul.msk.f32.gmra.mxu2 %vm38_vm0, %v1614_v34  ;;  %v611_v34 = vld [vmem:[%s1887_s5 + $0x28] sm:$0xff] }
 0x1c2   :  { %634 = vmatpush.msra.mxu3 %v611_v34 }
 0x1c4   :  { %635 = vmatpush.msra.mxu3 %v610_v42 }
 0x1c6   :  { %661 = vmatpush.msrb.mxu3 %v411_v50 }
 0x1c9   :  { %1256 = vmatmul.msk.f32.gmra.mxu2 %vm38_vm0, %v1605_v24  ;;  %v197_v24 = vpop.f32.mrf.mxu2 }
 0x1ca   :  { %v1775_v60 = vadd.f32 %v1280_v37, %v197_v24 }
 0x1d1   :  { %1257 = vmatmul.msk.f32.gmra.mxu2 %vm38_vm0, %v1616_v25 }
 0x1d9   :  { %1258 = vmatmul.msk.f32.gmra.mxu2 %vm38_vm0, %v1607_v26 }
 0x1da   :  { %v370_v5 = vpop.f32.mrf.mxu0 }
 0x1db   :  { %v394_v11 = vmul.f32 %v370_v5, %v1754_v10 }
 0x1e1   :  { %1259 = vmatmul.msk.f32.gmra.mxu2 %vm38_vm0, %v1618_v35  ;;  %v410_v35 = vld [vmem:[%s1887_s5 + $0x10] sm:$0xff] }
 0x1e2   :  { %v373_v25 = vpop.f32.mrf.mxu0  ;;  %662 = vmatpush.msrb.mxu3 %v410_v35 }
 0x1e4   :  { %663 = vmatpush.msrb.mxu3 %v409_v36 }
 0x1e6   :  { %664 = vmatpush.msrb.mxu3 %v408_v30 }
 0x1ea   :  { %v376_v26 = vpop.f32.mrf.mxu0 }
 0x1eb   :  { %v396_v17 = vmul.f32 %v376_v26, %v1752_v41 }
 0x1ec   :  { %v572_v27 = vpop.f32.mrf.mxu2 }
 0x1ed   :  { %v596_v43 = vmul.f32 %v572_v27, %v1754_v10  ;;  %v402_v4 = vadd.f32 %v396_v17, %v394_v11 }
 0x1f2   :  { %v379_v31 = vpop.f32.mrf.mxu0 }
 0x1f3   :  { %v397_v32 = vmul.f32 %v379_v31, %v1763_v52 }
 0x1f4   :  { %v575_v45 = vpop.f32.mrf.mxu2 }
 0x1f5   :  { %v597_v38 = vmul.f32 %v575_v45, %v1766_v18 }
 0x1fa   :  { %v382_v28 = vpop.f32.mrf.mxu0 }
 0x1fc   :  { %v578_v21 = vpop.f32.mrf.mxu2 }
 0x1fd   :  { %v598_v40 = vmul.f32 %v578_v21, %v1752_v41 }
 0x1ff   :  { %v604_v20 = vadd.f32 %v598_v40, %v596_v43 }
 0x202   :  { %v385_v47 = vpop.f32.mrf.mxu0 }
 0x203   :  { %v399_v24 = vmul.f32 %v385_v47, %v1768_v55 }
 0x204   :  { %v581_v29 = vpop.f32.mrf.mxu2 }
 0x205   :  { %v599_v56 = vmul.f32 %v581_v29, %v1763_v52 }
 0x207   :  { %v605_v9 = vadd.f32 %v599_v56, %v597_v38 }
 0x20a   :  { %v388_v2 = vpop.f32.mrf.mxu0 }
 0x20c   :  { %v584_v23 = vpop.f32.mrf.mxu2 }
 0x20d   :  { %v600_v8 = vmul.f32 %v584_v23, %v1756_v13 }
 0x20f   :  { %v606_v46 = vadd.f32 %v604_v20, %v600_v8 }
 0x212   :  { %v391_v34 = vpop.f32.mrf.mxu0 }
 0x213   :  { %v401_v5 = vmul.f32 %v391_v34, %v1775_v60 }
 0x214   :  { %v587_v39 = vpop.f32.mrf.mxu2 }
 0x215   :  { %v601_v58 = vmul.f32 %v587_v39, %v1768_v55 }
 0x217   :  { %v607_v63 = vadd.f32 %v605_v9, %v601_v58 }
 0x21c   :  { %v590_v48 = vpop.f32.mrf.mxu2 }
 0x21d   :  { %v602_v54 = vmul.f32 %v590_v48, %v1761_v44 }
 0x21f   :  { %v608_v57 = vadd.f32 %v606_v46, %v602_v54 }
 0x221   :  { %1229 = vmatmul.msk.f32.vlgmr.msra.gmra.mxu3 %vm38_vm0, %v608_v57 }
 0x222   :  { %716 = vmatpush.msra.mxu3 %v1501_v14  ;;  %v398_v14 = vmul.f32 %v382_v28, %v1756_v13 }
 0x224   :  { %v593_v12 = vpop.f32.mrf.mxu2  ;;  %717 = vmatpush.msra.mxu3 %v1506_v15  ;;  %v400_v15 = vmul.f32 %v388_v2, %v1761_v44  ;;  %v404_v7 = vadd.f32 %v402_v4, %v398_v14 }
 0x225   :  { %v603_v1 = vmul.f32 %v593_v12, %v1775_v60 }
 0x226   :  { %718 = vmatpush.msra.mxu3 %v1515_v16  ;;  %v406_v22 = vadd.f32 %v404_v7, %v400_v15  ;;  %v395_v16 = vmul.f32 %v373_v25, %v1766_v18 }
 0x227   :  { %v609_v3 = vadd.f32 %v607_v63, %v603_v1 }
 0x228   :  { %719 = vmatpush.msra.mxu3 %v1546_v19  ;;  %v403_v19 = vadd.f32 %v397_v32, %v395_v16 }
 0x229   :  { %1230 = vmatmul.msk.f32.gmra.mxu3 %vm38_vm0, %v609_v3 }
 0x22a   :  { %v405_v27 = vadd.f32 %v403_v19, %v399_v24 }
 0x22c   :  { %v407_v42 = vadd.f32 %v405_v27, %v401_v5 }
 0x231   :  { %1231 = vmatmul.msk.f32.vlgmr.msrb.gmra.mxu3 %vm38_vm0, %v406_v22 }
 0x239   :  { %1232 = vmatmul.msk.f32.gmra.mxu3 %vm38_vm0, %v407_v42 }
 0x241   :  { %1233 = vmatmul.msk.f32.vlgmr.msra.gmra.mxu3 %vm38_vm0, %v1576_v49 }
 0x249   :  { %1234 = vmatmul.msk.f32.gmra.mxu3 %vm38_vm0, %v1588_v61 }
 0x251   :  { %1235 = vmatmul.msk.f32.gmra.mxu3 %vm38_vm0, %v1579_v51 }
 0x259   :  { %1236 = vmatmul.msk.f32.gmra.mxu3 %vm38_vm0, %v1590_v62 }
 0x261   :  { %1237 = vmatmul.msk.f32.gmra.mxu3 %vm38_vm0, %v1581_v53 }
 0x269   :  { %1238 = vmatmul.msk.f32.gmra.mxu3 %vm38_vm0, %v1593_v0 }
 0x271   :  { %1239 = vmatmul.msk.f32.gmra.mxu3 %vm38_vm0, %v1586_v59 }
 0x279   :  { %1240 = vmatmul.msk.f32.gmra.mxu3 %vm38_vm0, %v1599_v6 }
 0x2a4   :  { %v637_v49 = vpop.f32.mrf.mxu3 }
 0x2ac   :  { %v640_v61 = vpop.f32.mrf.mxu3 }
 0x2b4   :  { %v666_v25 = vpop.f32.mrf.mxu3 }
 0x2b5   :  { %v1808_v45 = vadd.f32 %v666_v25, %v637_v49 }
 0x2bc   :  { %v669_v51 = vpop.f32.mrf.mxu3 }
 0x2bd   :  { %v1810_v21 = vadd.f32 %v669_v51, %v640_v61  ;;  %v873_v61 = vld [vmem:[%s1887_s5 + $0x58] sm:$0xff] }
 0x2be   :  { %892 = vmatpush.msra.mxu1 %v873_v61 }
 0x2c4   :  { %v721_v62 = vpop.f32.mrf.mxu3 }
 0x2cc   :  { %v724_v26 = vpop.f32.mrf.mxu3 }
 0x2d4   :  { %v727_v53 = vpop.f32.mrf.mxu3 }
 0x2d5   :  { %v745_v35 = vmax.f32 %v721_v62, %v727_v53 }
 0x2dc   :  { %v730_v50 = vpop.f32.mrf.mxu3 }
 0x2dd   :  { %v746_v37 = vmax.f32 %v724_v26, %v730_v50 }
 0x2e4   :  { %v733_v29 = vpop.f32.mrf.mxu3 }
 0x2e5   :  { %v747_v31 = vmax.f32 %v745_v35, %v733_v29  ;;  %v871_v35 = vld [vmem:[%s1887_s5 + $0x48] sm:$0xff] }
 0x2ec   :  { %v736_v0 = vpop.f32.mrf.mxu3 }
 0x2ed   :  { %v748_v8 = vmax.f32 %v746_v37, %v736_v0 }
 0x2f4   :  { %v739_v59 = vpop.f32.mrf.mxu3 }
 0x2f5   :  { %v749_v36 = vmax.f32 %v747_v31, %v739_v59 }
 0x2f7   :  { %v751_v23 = vsub.f32 %v721_v62, %v749_v36  ;;  %v753_v6 = vsub.f32 %v727_v53, %v749_v36  ;;  %v755_v30 = vsub.f32 %v733_v29, %v749_v36  ;;  %v757_v28 = vsub.f32 %v739_v59, %v749_v36  ;;  %v954_v53 = vpop.f32.mrf.mxu2  ;;  %v872_v29 = vld [vmem:[%s1887_s5 + $0x50] sm:$0xff] }
 0x2f8   :  { %893 = vmatpush.msra.mxu1 %v872_v29 }
 0x2f9   :  { %v759_v39 = vmul.f32 1.442695, %v751_v23  ;;  %v763_v40 = vmul.f32 1.442695, %v753_v6  ;;  %v767_v43 = vmul.f32 1.442695, %v755_v30 }
 0x2fa   :  { %v771_v20 = vmul.f32 1.442695, %v757_v28  ;;  %894 = vmatpush.msra.mxu1 %v871_v35  ;;  %v870_v23 = vld [vmem:[%s1887_s5 + $0x40] sm:$0xff] }
 0x2fb   :  { %1322 = vpow2.f32 %v759_v39 }
 0x2fc   :  { %1324 = vpow2.f32 %v763_v40  ;;  %v742_v47 = vpop.f32.mrf.mxu3  ;;  %895 = vmatpush.msra.mxu1 %v870_v23 }
 0x2fd   :  { %v750_v48 = vmax.f32 %v748_v8, %v742_v47  ;;  %1326 = vpow2.f32 %v767_v43 }
 0x2fe   :  { %1328 = vpow2.f32 %v771_v20  ;;  %1260 = vmatpush.msk.msrb.mxu1 %vm349_vm1, %v1638_v33 }
 0x2ff   :  { %v752_v46 = vsub.f32 %v724_v26, %v750_v48  ;;  %v754_v54 = vsub.f32 %v730_v50, %v750_v48  ;;  %v756_v56 = vsub.f32 %v736_v0, %v750_v48  ;;  %v758_v57 = vsub.f32 %v742_v47, %v750_v48  ;;  %v957_v50 = vpop.f32.mrf.mxu2 }
 0x301   :  { %v1323_v38 = vpop.eup %1322  ;;  %v761_v58 = vmul.f32 1.442695, %v752_v46  ;;  %v765_v9 = vmul.f32 1.442695, %v754_v54  ;;  %v769_v63 = vmul.f32 1.442695, %v756_v56 }
 0x302   :  { %v1325_v12 = vpop.eup %1324  ;;  %v773_v17 = vmul.f32 1.442695, %v758_v57 }
 0x303   :  { %v775_v1 = vadd.f32 %v1325_v12, %v1323_v38  ;;  %1330 = vpow2.f32 %v761_v58  ;;  %v1327_v2 = vpop.eup %1326 }
 0x304   :  { %1332 = vpow2.f32 %v765_v9  ;;  %v1329_v11 = vpop.eup %1328 }
 0x305   :  { %v777_v3 = vadd.f32 %v1327_v2, %v775_v1  ;;  %1334 = vpow2.f32 %v769_v63 }
 0x306   :  { %1336 = vpow2.f32 %v773_v17 }
 0x307   :  { %v779_v14 = vadd.f32 %v1329_v11, %v777_v3  ;;  %v960_v0 = vpop.f32.mrf.mxu2 }
 0x308   :  { %v978_v39 = vmax.f32 %v954_v53, %v960_v0 }
 0x309   :  { %v1331_v4 = vpop.eup %1330  ;;  %1338 = vrcp.f32 %v779_v14 }
 0x30a   :  { %v1333_v15 = vpop.eup %1332 }
 0x30b   :  { %v776_v7 = vadd.f32 %v1333_v15, %v1331_v4  ;;  %v1335_v32 = vpop.eup %1334 }
 0x30c   :  { %v1337_v34 = vpop.eup %1336 }
 0x30d   :  { %v778_v22 = vadd.f32 %v1335_v32, %v776_v7 }
 0x30f   :  { %v1339_v16 = vpop.eup %1338  ;;  %v780_v24 = vadd.f32 %v1337_v34, %v778_v22  ;;  %v963_v31 = vpop.f32.mrf.mxu2 }
 0x310   :  { %v783_v19 = vmul.f32 %v1339_v16, %v1323_v38  ;;  %v785_v42 = vmul.f32 %v1339_v16, %v1325_v12  ;;  %v787_v25 = vmul.f32 %v1339_v16, %v1327_v2  ;;  %v789_v62 = vmul.f32 %v1339_v16, %v1329_v11 }
 0x311   :  { %1340 = vrcp.f32 %v780_v24  ;;  %v979_v20 = vmax.f32 %v957_v50, %v963_v31 }
 0x312   :  { %1242 = vmatmul.msk.f32.vlgmr.msra.gmra.mxu0 %vm324_vm2, %v783_v19 }
 0x317   :  { %v1341_v5 = vpop.eup %1340  ;;  %v966_v59 = vpop.f32.mrf.mxu2 }
 0x318   :  { %v784_v27 = vmul.f32 %v1341_v5, %v1331_v4  ;;  %v786_v49 = vmul.f32 %v1341_v5, %v1333_v15  ;;  %v788_v51 = vmul.f32 %v1341_v5, %v1335_v32  ;;  %v790_v26 = vmul.f32 %v1341_v5, %v1337_v34 }
 0x319   :  { %v980_v40 = vmax.f32 %v978_v39, %v966_v59 }
 0x31a   :  { %1243 = vmatmul.msk.f32.gmra.mxu0 %vm324_vm2, %v784_v27 }
 0x31f   :  { %v969_v30 = vpop.f32.mrf.mxu2 }
 0x320   :  { %v981_v54 = vmax.f32 %v979_v20, %v969_v30 }
 0x322   :  { %1244 = vmatmul.msk.f32.gmra.mxu0 %vm324_vm2, %v785_v42 }
 0x327   :  { %v972_v37 = vpop.f32.mrf.mxu2 }
 0x328   :  { %v982_v43 = vmax.f32 %v980_v40, %v972_v37 }
 0x32a   :  { %1245 = vmatmul.msk.f32.gmra.mxu0 %vm324_vm2, %v786_v49  ;;  %v984_v47 = vsub.f32 %v954_v53, %v982_v43  ;;  %v986_v48 = vsub.f32 %v960_v0, %v982_v43  ;;  %v988_v9 = vsub.f32 %v966_v59, %v982_v43  ;;  %v990_v63 = vsub.f32 %v972_v37, %v982_v43 }
 0x32c   :  { %v992_v56 = vmul.f32 1.442695, %v984_v47  ;;  %v996_v58 = vmul.f32 1.442695, %v986_v48  ;;  %v1000_v1 = vmul.f32 1.442695, %v988_v9 }
 0x32d   :  { %v1004_v4 = vmul.f32 1.442695, %v990_v63  ;;  %v1105_v9 = vld [vmem:[%s1887_s5 + $0x70] sm:$0xff]  ;;  %v1104_v63 = vld [vmem:[%s1887_s5 + $0x68] sm:$0xff] }
 0x32e   :  { %1342 = vpow2.f32 %v992_v56 }
 0x32f   :  { %v975_v46 = vpop.f32.mrf.mxu2  ;;  %1344 = vpow2.f32 %v996_v58  ;;  %v1106_v58 = vld [vmem:[%s1887_s5 + $0x78] sm:$0xff] }
 0x330   :  { %v983_v57 = vmax.f32 %v981_v54, %v975_v46  ;;  %1346 = vpow2.f32 %v1000_v1  ;;  %1125 = vmatpush.msrb.mxu3 %v1106_v58 }
 0x332   :  { %1246 = vmatmul.msk.f32.gmra.mxu0 %vm324_vm2, %v787_v25  ;;  %v985_v33 = vsub.f32 %v957_v50, %v983_v57  ;;  %v987_v12 = vsub.f32 %v963_v31, %v983_v57  ;;  %v989_v15 = vsub.f32 %v969_v30, %v983_v57  ;;  %v991_v16 = vsub.f32 %v975_v46, %v983_v57 }
 0x333   :  { %1126 = vmatpush.msrb.mxu3 %v1105_v9 }
 0x334   :  { %v994_v2 = vmul.f32 1.442695, %v985_v33  ;;  %v998_v3 = vmul.f32 1.442695, %v987_v12  ;;  %v1343_v11 = vpop.eup %1342  ;;  %v1002_v24 = vmul.f32 1.442695, %v989_v15 }
 0x335   :  { %v1345_v14 = vpop.eup %1344  ;;  %1127 = vmatpush.msrb.mxu3 %v1104_v63 }
 0x336   :  { %1348 = vpow2.f32 %v994_v2  ;;  %v1008_v34 = vadd.f32 %v1345_v14, %v1343_v11  ;;  %v1347_v27 = vpop.eup %1346 }
 0x337   :  { %1350 = vpow2.f32 %v998_v3  ;;  %v1103_v3 = vld [vmem:[%s1887_s5 + $0x60] sm:$0xff] }
 0x338   :  { %1352 = vpow2.f32 %v1004_v4  ;;  %v1010_v25 = vadd.f32 %v1347_v27, %v1008_v34  ;;  %1128 = vmatpush.msrb.mxu3 %v1103_v3 }
 0x339   :  { %1354 = vpow2.f32 %v1002_v24 }
 0x33a   :  { %1247 = vmatmul.msk.f32.gmra.mxu0 %vm324_vm2, %v788_v51 }
 0x33c   :  { %v1349_v61 = vpop.eup %1348 }
 0x33d   :  { %v1351_v51 = vpop.eup %1350 }
 0x33e   :  { %v1353_v50 = vpop.eup %1352  ;;  %v1009_v31 = vadd.f32 %v1351_v51, %v1349_v61 }
 0x33f   :  { %v1012_v35 = vadd.f32 %v1353_v50, %v1010_v25  ;;  %v1355_v23 = vpop.eup %1354 }
 0x340   :  { %v1011_v37 = vadd.f32 %v1355_v23, %v1009_v31 }
 0x342   :  { %1248 = vmatmul.msk.f32.gmra.mxu0 %vm324_vm2, %v789_v62  ;;  %v1006_v62 = vmul.f32 1.442695, %v991_v16 }
 0x344   :  { %1356 = vpow2.f32 %v1006_v62 }
 0x345   :  { %1358 = vrcp.f32 %v1012_v35 }
 0x34a   :  { %1249 = vmatmul.msk.f32.gmra.mxu0 %vm324_vm2, %v790_v26  ;;  %v1357_v40 = vpop.eup %1356 }
 0x34b   :  { %v1359_v43 = vpop.eup %1358 }
 0x34c   :  { %v1018_v48 = vmul.f32 %v1359_v43, %v1345_v14  ;;  %v1020_v54 = vmul.f32 %v1359_v43, %v1347_v27  ;;  %v1022_v57 = vmul.f32 %v1359_v43, %v1353_v50 }
 0x38f   :  { %v832_v36 = vpop.f32.mrf.mxu0 }
 0x390   :  { %v856_v32 = vmul.f32 %v832_v36, %v1754_v10 }
 0x397   :  { %v835_v6 = vpop.f32.mrf.mxu0 }
 0x398   :  { %v857_v29 = vmul.f32 %v835_v6, %v1766_v18  ;;  %v1013_v6 = vadd.f32 %v1357_v40, %v1011_v37 }
 0x39a   :  { %1360 = vrcp.f32 %v1013_v6 }
 0x39f   :  { %v838_v28 = vpop.f32.mrf.mxu0 }
 0x3a0   :  { %v858_v7 = vmul.f32 %v838_v28, %v1752_v41  ;;  %v1361_v20 = vpop.eup %1360 }
 0x3a1   :  { %v1017_v47 = vmul.f32 %v1361_v20, %v1349_v61  ;;  %v1019_v46 = vmul.f32 %v1361_v20, %v1351_v51  ;;  %v1021_v56 = vmul.f32 %v1361_v20, %v1355_v23 }
 0x3a2   :  { %v864_v19 = vadd.f32 %v858_v7, %v856_v32 }
 0x3a7   :  { %v841_v8 = vpop.f32.mrf.mxu0 }
 0x3a8   :  { %v859_v26 = vmul.f32 %v841_v8, %v1763_v52  ;;  %v1016_v8 = vmul.f32 %v1359_v43, %v1343_v11 }
 0x3aa   :  { %v865_v59 = vadd.f32 %v859_v26, %v857_v29 }
 0x3af   :  { %v844_v38 = vpop.f32.mrf.mxu0 }
 0x3b0   :  { %v860_v22 = vmul.f32 %v844_v38, %v1756_v13  ;;  %v1023_v38 = vmul.f32 %v1361_v20, %v1357_v40 }
 0x3b2   :  { %v866_v42 = vadd.f32 %v864_v19, %v860_v22 }
 0x3b7   :  { %v847_v17 = vpop.f32.mrf.mxu0 }
 0x3b8   :  { %v861_v0 = vmul.f32 %v847_v17, %v1768_v55 }
 0x3ba   :  { %v867_v30 = vadd.f32 %v865_v59, %v861_v0 }
 0x3bf   :  { %v850_v5 = vpop.f32.mrf.mxu0 }
 0x3c0   :  { %v862_v49 = vmul.f32 %v850_v5, %v1761_v44 }
 0x3c2   :  { %v868_v53 = vadd.f32 %v866_v42, %v862_v49 }
 0x3c4   :  { %1250 = vmatmul.msk.f32.vlgmr.msra.gmra.mxu1 %vm38_vm0, %v868_v53 }
 0x3c7   :  { %v853_v36 = vpop.f32.mrf.mxu0 }
 0x3c8   :  { %v863_v28 = vmul.f32 %v853_v36, %v1775_v60 }
 0x3ca   :  { %v869_v39 = vadd.f32 %v867_v30, %v863_v28 }
 0x3cc   :  { %1251 = vmatmul.msk.f32.gmra.mxu1 %vm38_vm0, %v869_v39 }
 0x3d4   :  { %1261 = vmatmul.msk.f32.vlgmr.msrb.gmra.mxu1 %vm324_vm2, %v1016_v8 }
 0x3dc   :  { %1262 = vmatmul.msk.f32.gmra.mxu1 %vm324_vm2, %v1017_v47 }
 0x3e4   :  { %1263 = vmatmul.msk.f32.gmra.mxu1 %vm324_vm2, %v1018_v48 }
 0x3ec   :  { %1264 = vmatmul.msk.f32.gmra.mxu1 %vm324_vm2, %v1019_v46 }
 0x3f4   :  { %1265 = vmatmul.msk.f32.gmra.mxu1 %vm324_vm2, %v1020_v54 }
 0x3fc   :  { %1266 = vmatmul.msk.f32.gmra.mxu1 %vm324_vm2, %v1021_v56 }
 0x404   :  { %1267 = vmatmul.msk.f32.gmra.mxu1 %vm324_vm2, %v1022_v57 }
 0x40c   :  { %1268 = vmatmul.msk.f32.gmra.mxu1 %vm324_vm2, %v1023_v38 }
 0x441   :  { %v897_v33 = vpop.f32.mrf.mxu1 }
 0x442   :  { %v903_v12 = vadd.f32 %v897_v33, %v1808_v45 }
 0x449   :  { %v900_v1 = vpop.f32.mrf.mxu1 }
 0x44a   :  { %v904_v2 = vadd.f32 %v900_v1, %v1810_v21 }
 0x451   :  { %v1065_v17 = vpop.f32.mrf.mxu1 }
 0x452   :  { %v1089_v32 = vmul.f32 %v1065_v17, %v1754_v10 }
 0x459   :  { %v1068_v11 = vpop.f32.mrf.mxu1 }
 0x45a   :  { %v1090_v27 = vmul.f32 %v1068_v11, %v1766_v18 }
 0x461   :  { %v1071_v14 = vpop.f32.mrf.mxu1 }
 0x462   :  { %v1091_v45 = vmul.f32 %v1071_v14, %v1752_v41 }
 0x464   :  { %v1097_v34 = vadd.f32 %v1091_v45, %v1089_v32 }
 0x469   :  { %v1074_v4 = vpop.f32.mrf.mxu1 }
 0x46a   :  { %v1092_v19 = vmul.f32 %v1074_v4, %v1763_v52 }
 0x46c   :  { %v1098_v49 = vadd.f32 %v1092_v19, %v1090_v27 }
 0x471   :  { %v1077_v15 = vpop.f32.mrf.mxu1 }
 0x472   :  { %v1093_v22 = vmul.f32 %v1077_v15, %v1756_v13 }
 0x474   :  { %v1099_v21 = vadd.f32 %v1097_v34, %v1093_v22 }
 0x479   :  { %v1080_v7 = vpop.f32.mrf.mxu1 }
 0x47a   :  { %v1094_v42 = vmul.f32 %v1080_v7, %v1768_v55 }
 0x47c   :  { %v1100_v61 = vadd.f32 %v1098_v49, %v1094_v42 }
 0x481   :  { %v1083_v16 = vpop.f32.mrf.mxu1 }
 0x482   :  { %v1095_v24 = vmul.f32 %v1083_v16, %v1761_v44  ;;  %v1281_v44 = vld [vmem:[%s1887_s5 + $0x80] ss:$0 sm:$0xff] }
 0x484   :  { %v1101_v5 = vadd.f32 %v1099_v21, %v1095_v24 }
 0x486   :  { %1269 = vmatmul.msk.f32.vlgmr.msrb.gmra.mxu3 %vm38_vm0, %v1101_v5 }
 0x489   :  { %v1086_v41 = vpop.f32.mrf.mxu1 }
 0x48a   :  { %v1096_v10 = vmul.f32 %v1086_v41, %v1775_v60 }
 0x48c   :  { %v1102_v13 = vadd.f32 %v1100_v61, %v1096_v10 }
 0x48e   :  { %1270 = vmatmul.msk.f32.gmra.mxu3 %vm38_vm0, %v1102_v13 }
 0x509   :  { %v1130_v52 = vpop.f32.mrf.mxu3 }
 0x50a   :  { %v1136_v25 = vadd.f32 %v1130_v52, %v903_v12 }
 0x50c   :  { %v1140_v18 = vadd.f32 %v1281_v44, %v1136_v25 }
 0x50e   :  { %1143 = vst.msk [vmem:[#allocation2] sm:$0xff] %vm1142_vm3, %v1140_v18 }
 0x511   :  { %v1133_v55 = vpop.f32.mrf.mxu3 }
 0x512   :  { %v1137_v60 = vadd.f32 %v1133_v55, %v904_v2 }
 0x514   :  { %v1141_v51 = vadd.f32 %v1281_v44, %v1137_v60 }
 0x516   :  { %1144 = vst.msk [vmem:[#allocation2 + $0x8] sm:$0xff] %vm1142_vm3, %v1141_v51 }
 0x517   :  { %1157 = dma.vmem_to_hbm [thread:$0]  %s1150_s7, 256, %s1152_s10, [#allocation3], %s1389_s11, %s1389_s11, %s1390_s12  }
 0x518   :  { %1386 = dma.done.wait [#allocation3], 256  }
 0x519   :  { %1387 = vsyncadd [#allocation3], 4294967040 }
 0x51a   :  { %1162 = vsyncpa [#allocation3], 1 }

</bundles_post_ra>
